<compile_context>
chip_gen: v7x
topology: tpu7x:2x2x1
jax: 0.10.0
libtpu: 0.0.40
codegen_flags: <defaults>
</compile_context>

<pallas_src>
import functools

import jax
import jax.numpy as jnp
from jax.experimental import pallas as pl
from jax.experimental.pallas import tpu as pltpu


def _round8(n):
    return (n + 7) // 8 * 8


def _round_up(n, m):
    return (n + m - 1) // m * m


def _layout(T, P):
    """Static row/col layout of the packed weight/bias slabs (Python ints only)."""
    L1 = T - 2               # after conv1 (k=3)
    L2 = L1 - 2              # after conv2 (k=3)
    LP = L2 // 2             # after MaxPool1d(2, 2)
    R = LP - 2               # after conv3 (k=3) == remaining_timesteps

    rows = dict(w1=12 * L1, w2=24 * LP, w3=32 * R, we=2 * P, wd=T)
    cols = dict(w1=T, w2=12 * L1, w3=24 * LP, we=32 * R, wd=P)

    # Weight slab: each segment starts at an 8-aligned row offset, columns from 0.
    off_w, o = {}, 0
    for name in ("w1", "w2e", "w2o", "w3", "we", "wd"):
        base = name if name in rows else "w2"
        off_w[name] = o
        o += _round8(rows[base])
    w_rows, w_cols = o, max(cols.values())

    # Bias slab (one value per output row of the corresponding matmul).
    off_b, o = {}, 0
    for name, r in (("b1", rows["w1"]), ("b2", rows["w2"]), ("b3", rows["w3"]),
                    ("be", rows["we"]), ("bd", rows["wd"])):
        off_b[name] = o
        o += _round8(r)
    b_rows = o

    return dict(T=T, P=P, L1=L1, L2=L2, LP=LP, R=R, rows=rows, cols=cols,
                off_w=off_w, w_rows=w_rows, w_cols=w_cols,
                off_b=off_b, b_rows=b_rows)


def t2p_kernel(x_ref, u_ref, w_ref, b_ref, out_ref, *, lay, inv_lambda):
    f32 = jnp.float32
    eps = 1e-7
    P = lay["P"]
    rows, cols = lay["rows"], lay["cols"]
    ow, ob = lay["off_w"], lay["off_b"]

    def wseg(name, base=None):
        base = base or name
        r0 = ow[name]
        return w_ref[r0:r0 + rows[base], 0:cols[base]]

    def bseg(name, base):
        r0 = ob[name]
        return b_ref[r0:r0 + rows[base], :]

    x = x_ref[...]                                    # (T, B)  batch on lanes
    u = u_ref[...]                                    # (P, B)

    # ---- Conv1d(1->12, k=3) + ReLU : one Toeplitz matmul ----
    h1 = jnp.dot(wseg("w1"), x, preferred_element_type=f32) + bseg("b1", "w1")
    h1 = jnp.maximum(h1, 0.0)                         # (12*L1, B)

    # ---- Conv1d(12->24, k=3) + ReLU + MaxPool1d(2,2):
    #      pool folded into even/odd weight matrices (relu/max commute). ----
    s_e = jnp.dot(wseg("w2e", "w2"), h1, preferred_element_type=f32)
    s_o = jnp.dot(wseg("w2o", "w2"), h1, preferred_element_type=f32)
    pooled = jnp.maximum(jnp.maximum(s_e, s_o) + bseg("b2", "w2"), 0.0)  # (24*LP, B)

    # ---- Conv1d(24->32, k=3) + ReLU ----
    feat = jnp.dot(wseg("w3"), pooled, preferred_element_type=f32) + bseg("b3", "w3")
    feat = jnp.maximum(feat, 0.0)                     # (32*R, B)

    # ---- "encoded" Conv3d(32->2, (P, R, 1), padding (P-1,0,0)) : one matmul ----
    enc = jnp.dot(wseg("we"), feat, preferred_element_type=f32) + bseg("be", "we")
    # Softplus (torch beta=1, threshold=20)
    enc = jnp.where(enc > 20.0, enc, jnp.log(1.0 + jnp.exp(jnp.minimum(enc, 20.0))))
    a1 = enc[0:P, :]                                  # alpha_1  (P, B)
    a2 = enc[P:2 * P, :]                              # alpha_2  (P, B)

    # ---- Concrete-distribution reparametrization (stable log-space form):
    #      z = y/(1+y)*a1 with y = (a1/(a2+eps) * u/(1-u+eps))^(1/lambda)
    #        = sigmoid((1/l)*(log a1 - log(a2+eps) + log u - log(1-u+eps))) * a1
    logit = inv_lambda * (jnp.log(a1) - jnp.log(a2 + eps)
                          + jnp.log(u) - jnp.log(1.0 - u + eps))
    z = a1 / (1.0 + jnp.exp(-logit))                  # (P, B)

    # ---- Softmax over the pattern axis (torch dim=2) ----
    z = z - jnp.max(z, axis=0, keepdims=True)
    ez = jnp.exp(z)
    zs = ez / jnp.sum(ez, axis=0, keepdims=True)      # (P, B)

    # ---- ConvTranspose3d(1->1, (P, T, 1), padding (P-1,0,0)) : one matmul ----
    out = jnp.dot(wseg("wd"), zs, preferred_element_type=f32) + bseg("bd", "wd")
    out_ref[...] = out.astype(out_ref.dtype)          # (T, B)


def make_params(key, T, P):
    """Deterministic torch-style init, then host-side repack into two slabs."""
    lay = _layout(T, P)
    L1, LP, R = lay["L1"], lay["LP"], lay["R"]
    ks = jax.random.split(key, 10)

    def init(k, shape, fan_in):
        bound = 1.0 / float(fan_in) ** 0.5
        return jax.random.uniform(k, shape, jnp.float32, -bound, bound)

    w1_t = init(ks[0], (12, 1, 3), 1 * 3)
    b1_t = init(ks[1], (12,), 1 * 3)
    w2_t = init(ks[2], (24, 12, 3), 12 * 3)
    b2_t = init(ks[3], (24,), 12 * 3)
    w3_t = init(ks[4], (32, 24, 3), 24 * 3)
    b3_t = init(ks[5], (32,), 24 * 3)
    wenc_t = init(ks[6], (2, 32, P, R, 1), 32 * P * R)   # Conv3d weight
    benc_t = init(ks[7], (2,), 32 * P * R)
    wdec_t = init(ks[8], (1, 1, P, T, 1), P * T)         # ConvTranspose3d weight
    bdec_t = init(ks[9], (1,), P * T)

    def conv_toeplitz(w, l_in, out_pos):
        # w: (Cout, Cin, K).  M[co*Lout + l, ci*l_in + m] = w[co, ci, m - out_pos[l]]
        cout, cin, K = w.shape
        m = jnp.arange(l_in)
        k = m[None, :] - out_pos[:, None]                 # (Lout, l_in)
        valid = (k >= 0) & (k < K)
        kc = jnp.clip(k, 0, K - 1)
        Wt = w[:, :, kc]                                  # (Cout, Cin, Lout, l_in)
        Wt = jnp.where(valid[None, None], Wt, 0.0)
        return jnp.transpose(Wt, (0, 2, 1, 3)).reshape(cout * out_pos.shape[0],
                                                       cin * l_in)

    W1T = conv_toeplitz(w1_t, T, jnp.arange(L1))                    # (12*L1, T)
    W2e = conv_toeplitz(w2_t, L1, 2 * jnp.arange(LP))               # (24*LP, 12*L1)
    W2o = conv_toeplitz(w2_t, L1, 2 * jnp.arange(LP) + 1)           # (24*LP, 12*L1)
    W3T = conv_toeplitz(w3_t, LP, jnp.arange(R))                    # (32*R, 24*LP)
    # encoder Conv3d -> (2P, 32R): WE[co*P+d, ci*R+r] = wenc[co, ci, P-1-d, r, 0]
    WE = jnp.transpose(wenc_t[:, :, ::-1, :, 0], (0, 2, 1, 3)).reshape(2 * P, 32 * R)
    # decoder ConvTranspose3d -> (T, P): WD[t, d] = wdec[0, 0, P-1-d, t, 0]
    WD = jnp.transpose(wdec_t[0, 0, ::-1, :, 0], (1, 0))

    ow, ob = lay["off_w"], lay["off_b"]
    Wpack = jnp.zeros((lay["w_rows"], lay["w_cols"]), jnp.float32)
    for name, mat in (("w1", W1T), ("w2e", W2e), ("w2o", W2o),
                      ("w3", W3T), ("we", WE), ("wd", WD)):
        r, c = mat.shape
        Wpack = Wpack.at[ow[name]:ow[name] + r, :c].set(mat)

    Bpack = jnp.zeros((lay["b_rows"], 1), jnp.float32)
    for name, vec, rep in (("b1", b1_t, L1), ("b2", b2_t, LP), ("b3", b3_t, R),
                           ("be", benc_t, P),
                           ("bd", jnp.full((1,), bdec_t[0], jnp.float32), T)):
        col = jnp.repeat(vec, rep).reshape(-1, 1)
        Bpack = Bpack.at[ob[name]:ob[name] + col.shape[0], :].set(col)

    return dict(Wpack=Wpack, Bpack=Bpack, layout=lay)


def t2p_forward(x, u, params, lambda_1, b_tile=256):
    N, C, T = x.shape
    assert C == 1
    lay = params["layout"]
    P = lay["P"]
    assert T == lay["T"]

    # Pick a lane-dense batch tile (multiple of 128), pad the batch to it.
    b_tile = min(b_tile, _round_up(N, 128))
    Np = _round_up(N, b_tile)

    x_t = jnp.pad(jnp.transpose(x[:, 0, :]), ((0, 0), (0, Np - N)))            # (T, Np)
    u_t = jnp.pad(jnp.transpose(u[:, :, 0]), ((0, 0), (0, Np - N)),
                  constant_values=0.5)                                         # (P, Np)

    kernel = functools.partial(t2p_kernel, lay=lay, inv_lambda=1.0 / lambda_1)

    out = pl.pallas_call(
        kernel,
        out_shape=jax.ShapeDtypeStruct((T, Np), jnp.float32),
        grid_spec=pltpu.PrefetchScalarGridSpec(
            num_scalar_prefetch=0,
            grid=(Np // b_tile,),
            in_specs=[
                pl.BlockSpec((T, b_tile), lambda i: (0, i)),                   # x
                pl.BlockSpec((P, b_tile), lambda i: (0, i)),                   # U
                pl.BlockSpec((lay["w_rows"], lay["w_cols"]), lambda i: (0, 0)),  # weights
                pl.BlockSpec((lay["b_rows"], 1), lambda i: (0, 0)),              # biases
            ],
            out_specs=pl.BlockSpec((T, b_tile), lambda i: (0, i)),
        ),
        compiler_params=pltpu.CompilerParams(dimension_semantics=("parallel",)),
    )(x_t, u_t, params["Wpack"], params["Bpack"])

    # torch ConvTranspose3d output layout: (N, 1, 1, T, 1)
    return jnp.transpose(out[:, :N]).reshape(N, 1, 1, T, 1)


if __name__ == "__main__":
    timesteps = 16
    n_patterns = 4
    lambda_1 = 2.0
    batch = 2

    key = jax.random.PRNGKey(0)
    kp, kx, ku = jax.random.split(key, 3)
    params = make_params(kp, timesteps, n_patterns)
    x = jax.random.normal(kx, (batch, 1, timesteps), jnp.float32)
    # TODO(synk): torch.rand inside repar() is replaced by host-side uniforms
    # passed into the kernel (same distribution, not a bit-identical stream).
    u = jax.random.uniform(ku, (batch, n_patterns, 1), jnp.float32)

    out = t2p_forward(x, u, params, lambda_1)
    jax.block_until_ready(out)
    assert out.shape == (batch, 1, 1, timesteps, 1)
    assert bool(jnp.all(jnp.isfinite(out)))
    print("KERNEL_OK")
</pallas_src>

<mosaic_0001>
module attributes {stable_mosaic.version = 11 : i64} {
  func.func @t2p_kernel(%arg0: i32, %arg1: memref<16x128xf32, #tpu.memory_space<vmem>>, %arg2: memref<4x128xf32, #tpu.memory_space<vmem>>, %arg3: memref<608x168xf32, #tpu.memory_space<vmem>>, %arg4: memref<464x1xf32, #tpu.memory_space<vmem>>, %arg5: memref<16x128xf32, #tpu.memory_space<vmem>>) attributes {dimension_semantics = [#tpu.dimension_semantics<parallel>], iteration_bounds = array<i64: 1>, scalar_prefetch = 0 : i64, scratch_operands = 0 : i64, tpu.core_type = #tpu.core_type<tc>, window_params = [{transform_indices = @transform_0, window_bounds = array<i64: 16, 128>}, {transform_indices = @transform_1, window_bounds = array<i64: 4, 128>}, {pipeline_mode = #tpu.pipeline_mode<synchronous>, transform_indices = @transform_2, window_bounds = array<i64: 608, 168>}, {pipeline_mode = #tpu.pipeline_mode<synchronous>, transform_indices = @transform_3, window_bounds = array<i64: 464, 1>}, {transform_indices = @transform_4, window_bounds = array<i64: 16, 128>}]} {
    %c0 = arith.constant 0 : index
    %c0_0 = arith.constant 0 : index
    %0 = vector.load %arg1[%c0, %c0_0] : memref<16x128xf32, #tpu.memory_space<vmem>>, vector<16x128xf32>
    %c0_1 = arith.constant 0 : index
    %c0_2 = arith.constant 0 : index
    %1 = vector.load %arg2[%c0_1, %c0_2] : memref<4x128xf32, #tpu.memory_space<vmem>>, vector<4x128xf32>
    %c0_3 = arith.constant 0 : index
    %c0_4 = arith.constant 0 : index
    %2 = vector.load %arg3[%c0_3, %c0_4] : memref<608x168xf32, #tpu.memory_space<vmem>>, vector<168x16xf32>
    %cst = arith.constant dense<0.000000e+00> : vector<168x128xf32>
    %3 = tpu.matmul %2, %0, %cst {dimension_numbers = #tpu.dot_dimension_numbers<[1], [0], [0], [1], [0, 0, 1, 1], [], []>} : vector<168x16xf32>, vector<16x128xf32>, vector<168x128xf32> -> vector<168x128xf32>
    %c0_5 = arith.constant 0 : index
    %c0_6 = arith.constant 0 : index
    %4 = vector.load %arg4[%c0_5, %c0_6] : memref<464x1xf32, #tpu.memory_space<vmem>>, vector<168x1xf32>
    %5 = vector.broadcast %4 : vector<168x1xf32> to vector<168x128xf32>
    %6 = arith.addf %3, %5 : vector<168x128xf32>
    %cst_7 = arith.constant 0.000000e+00 : f32
    %7 = vector.broadcast %cst_7 : f32 to vector<168x128xf32>
    %8 = arith.maximumf %6, %7 : vector<168x128xf32>
    %c168 = arith.constant 168 : index
    %c0_8 = arith.constant 0 : index
    %9 = vector.load %arg3[%c168, %c0_8] : memref<608x168xf32, #tpu.memory_space<vmem>>, vector<144x168xf32>
    %cst_9 = arith.constant dense<0.000000e+00> : vector<144x128xf32>
    %10 = tpu.matmul %9, %8, %cst_9 {dimension_numbers = #tpu.dot_dimension_numbers<[1], [0], [0], [1], [0, 0, 1, 1], [], []>} : vector<144x168xf32>, vector<168x128xf32>, vector<144x128xf32> -> vector<144x128xf32>
    %c312 = arith.constant 312 : index
    %c0_10 = arith.constant 0 : index
    %11 = vector.load %arg3[%c312, %c0_10] : memref<608x168xf32, #tpu.memory_space<vmem>>, vector<144x168xf32>
    %cst_11 = arith.constant dense<0.000000e+00> : vector<144x128xf32>
    %12 = tpu.matmul %11, %8, %cst_11 {dimension_numbers = #tpu.dot_dimension_numbers<[1], [0], [0], [1], [0, 0, 1, 1], [], []>} : vector<144x168xf32>, vector<168x128xf32>, vector<144x128xf32> -> vector<144x128xf32>
    %13 = arith.maximumf %10, %12 : vector<144x128xf32>
    %c168_12 = arith.constant 168 : index
    %c0_13 = arith.constant 0 : index
    %14 = vector.load %arg4[%c168_12, %c0_13] : memref<464x1xf32, #tpu.memory_space<vmem>>, vector<144x1xf32>
    %15 = vector.broadcast %14 : vector<144x1xf32> to vector<144x128xf32>
    %16 = arith.addf %13, %15 : vector<144x128xf32>
    %cst_14 = arith.constant 0.000000e+00 : f32
    %17 = vector.broadcast %cst_14 : f32 to vector<144x128xf32>
    %18 = arith.maximumf %16, %17 : vector<144x128xf32>
    %c456 = arith.constant 456 : index
    %c0_15 = arith.constant 0 : index
    %19 = vector.load %arg3[%c456, %c0_15] : memref<608x168xf32, #tpu.memory_space<vmem>>, vector<128x144xf32>
    %cst_16 = arith.constant dense<0.000000e+00> : vector<128x128xf32>
    %20 = tpu.matmul %19, %18, %cst_16 {dimension_numbers = #tpu.dot_dimension_numbers<[1], [0], [0], [1], [0, 0, 1, 1], [], []>} : vector<128x144xf32>, vector<144x128xf32>, vector<128x128xf32> -> vector<128x128xf32>
    %c312_17 = arith.constant 312 : index
    %c0_18 = arith.constant 0 : index
    %21 = vector.load %arg4[%c312_17, %c0_18] : memref<464x1xf32, #tpu.memory_space<vmem>>, vector<128x1xf32>
    %22 = vector.broadcast %21 : vector<128x1xf32> to vector<128x128xf32>
    %23 = arith.addf %20, %22 : vector<128x128xf32>
    %cst_19 = arith.constant 0.000000e+00 : f32
    %24 = vector.broadcast %cst_19 : f32 to vector<128x128xf32>
    %25 = arith.maximumf %23, %24 : vector<128x128xf32>
    %c584 = arith.constant 584 : index
    %c0_20 = arith.constant 0 : index
    %26 = vector.load %arg3[%c584, %c0_20] : memref<608x168xf32, #tpu.memory_space<vmem>>, vector<8x128xf32>
    %cst_21 = arith.constant dense<0.000000e+00> : vector<8x128xf32>
    %27 = tpu.matmul %26, %25, %cst_21 {dimension_numbers = #tpu.dot_dimension_numbers<[1], [0], [0], [1], [0, 0, 1, 1], [], []>} : vector<8x128xf32>, vector<128x128xf32>, vector<8x128xf32> -> vector<8x128xf32>
    %c440 = arith.constant 440 : index
    %c0_22 = arith.constant 0 : index
    %28 = vector.load %arg4[%c440, %c0_22] : memref<464x1xf32, #tpu.memory_space<vmem>>, vector<8x1xf32>
    %29 = vector.broadcast %28 : vector<8x1xf32> to vector<8x128xf32>
    %30 = arith.addf %27, %29 : vector<8x128xf32>
    %cst_23 = arith.constant 2.000000e+01 : f32
    %31 = vector.broadcast %cst_23 : f32 to vector<8x128xf32>
    %32 = arith.cmpf ogt, %30, %31 : vector<8x128xf32>
    %cst_24 = arith.constant 2.000000e+01 : f32
    %33 = vector.broadcast %cst_24 : f32 to vector<8x128xf32>
    %34 = arith.minimumf %30, %33 : vector<8x128xf32>
    %35 = math.exp %34 : vector<8x128xf32>
    %cst_25 = arith.constant 1.000000e+00 : f32
    %36 = vector.broadcast %cst_25 : f32 to vector<8x128xf32>
    %37 = arith.addf %36, %35 : vector<8x128xf32>
    %38 = math.log %37 : vector<8x128xf32>
    %39 = arith.select %32, %30, %38 : vector<8x128xi1>, vector<8x128xf32>
    %40 = vector.extract_strided_slice %39 {offsets = [0, 0], sizes = [4, 128], strides = [1, 1]} : vector<8x128xf32> to vector<4x128xf32>
    %41 = vector.extract_strided_slice %39 {offsets = [4, 0], sizes = [4, 128], strides = [1, 1]} : vector<8x128xf32> to vector<4x128xf32>
    %42 = math.log %40 : vector<4x128xf32>
    %cst_26 = arith.constant 1.000000e-07 : f32
    %43 = vector.broadcast %cst_26 : f32 to vector<4x128xf32>
    %44 = arith.addf %41, %43 : vector<4x128xf32>
    %45 = math.log %44 : vector<4x128xf32>
    %46 = arith.subf %42, %45 : vector<4x128xf32>
    %47 = math.log %1 : vector<4x128xf32>
    %48 = arith.addf %46, %47 : vector<4x128xf32>
    %cst_27 = arith.constant 1.000000e+00 : f32
    %49 = vector.broadcast %cst_27 : f32 to vector<4x128xf32>
    %50 = arith.subf %49, %1 : vector<4x128xf32>
    %cst_28 = arith.constant 1.000000e-07 : f32
    %51 = vector.broadcast %cst_28 : f32 to vector<4x128xf32>
    %52 = arith.addf %50, %51 : vector<4x128xf32>
    %53 = math.log %52 : vector<4x128xf32>
    %54 = arith.subf %48, %53 : vector<4x128xf32>
    %cst_29 = arith.constant 5.000000e-01 : f32
    %55 = vector.broadcast %cst_29 : f32 to vector<4x128xf32>
    %56 = arith.mulf %55, %54 : vector<4x128xf32>
    %cst_30 = arith.constant 0.000000e+00 : f32
    %57 = vector.broadcast %cst_30 : f32 to vector<4x128xf32>
    %58 = arith.subf %57, %56 : vector<4x128xf32>
    %59 = math.exp %58 : vector<4x128xf32>
    %cst_31 = arith.constant 1.000000e+00 : f32
    %60 = vector.broadcast %cst_31 : f32 to vector<4x128xf32>
    %61 = arith.addf %60, %59 : vector<4x128xf32>
    %62 = arith.divf %40, %61 : vector<4x128xf32>
    %cst_32 = arith.constant dense<0xFF800000> : vector<128xf32>
    %63 = vector.multi_reduction <maximumf>, %62, %cst_32 [0] : vector<4x128xf32> to vector<128xf32>
    %64 = vector.shape_cast %63 : vector<128xf32> to vector<1x128xf32>
    %65 = vector.broadcast %64 : vector<1x128xf32> to vector<4x128xf32>
    %66 = arith.subf %62, %65 : vector<4x128xf32>
    %67 = math.exp %66 : vector<4x128xf32>
    %cst_33 = arith.constant dense<0.000000e+00> : vector<128xf32>
    %68 = vector.multi_reduction <add>, %67, %cst_33 [0] : vector<4x128xf32> to vector<128xf32>
    %69 = vector.shape_cast %68 : vector<128xf32> to vector<1x128xf32>
    %70 = vector.broadcast %69 : vector<1x128xf32> to vector<4x128xf32>
    %71 = arith.divf %67, %70 : vector<4x128xf32>
    %c592 = arith.constant 592 : index
    %c0_34 = arith.constant 0 : index
    %72 = vector.load %arg3[%c592, %c0_34] : memref<608x168xf32, #tpu.memory_space<vmem>>, vector<16x4xf32>
    %cst_35 = arith.constant dense<0.000000e+00> : vector<16x128xf32>
    %73 = tpu.matmul %72, %71, %cst_35 {dimension_numbers = #tpu.dot_dimension_numbers<[1], [0], [0], [1], [0, 0, 1, 1], [], []>} : vector<16x4xf32>, vector<4x128xf32>, vector<16x128xf32> -> vector<16x128xf32>
    %c448 = arith.constant 448 : index
    %c0_36 = arith.constant 0 : index
    %74 = vector.load %arg4[%c448, %c0_36] : memref<464x1xf32, #tpu.memory_space<vmem>>, vector<16x1xf32>
    %75 = vector.broadcast %74 : vector<16x1xf32> to vector<16x128xf32>
    %76 = arith.addf %73, %75 : vector<16x128xf32>
    %c0_37 = arith.constant 0 : index
    %c0_38 = arith.constant 0 : index
    %77 = vector.load %arg5[%c0_37, %c0_38] : memref<16x128xf32, #tpu.memory_space<vmem>>, vector<16x128xf32>
    tpu.vector_store %arg5[%c0_37, %c0_38], %76 {strides = array<i32>} : memref<16x128xf32, #tpu.memory_space<vmem>>, vector<16x128xf32>,
    return
  }
  func.func @transform_0(%arg0: i32) -> (i32, i32) {
    %c0_i32 = arith.constant 0 : i32
    %c0_i32_0 = arith.constant 0 : i32
    return %c0_i32, %arg0 : i32, i32
  }
  func.func @transform_1(%arg0: i32) -> (i32, i32) {
    %c0_i32 = arith.constant 0 : i32
    %c0_i32_0 = arith.constant 0 : i32
    return %c0_i32, %arg0 : i32, i32
  }
  func.func @transform_2(%arg0: i32) -> (i32, i32) {
    %c0_i32 = arith.constant 0 : i32
    %c0_i32_0 = arith.constant 0 : i32
    %c0_i32_1 = arith.constant 0 : i32
    return %c0_i32, %c0_i32_0 : i32, i32
  }
  func.func @transform_3(%arg0: i32) -> (i32, i32) {
    %c0_i32 = arith.constant 0 : i32
    %c0_i32_0 = arith.constant 0 : i32
    %c0_i32_1 = arith.constant 0 : i32
    return %c0_i32, %c0_i32_0 : i32, i32
  }
  func.func @transform_4(%arg0: i32) -> (i32, i32) {
    %c0_i32 = arith.constant 0 : i32
    %c0_i32_0 = arith.constant 0 : i32
    return %c0_i32, %arg0 : i32, i32
  }
}

</mosaic_0001>

<bundles_post_ra>
// kernel: tpu_custom_call.1
= control target key start
LH: loop header
LB: loop body
LE: loop exit
PB: predicated region body
PF: predicated region fallthrough
CT: control target
= control target key end

     0   :  { %v2052_v3 = vmov 0   ;;  %v2053_v5 = vmov 0.0|0.0   ;;  %vm2054_vm0 = vmmov 0   ;;  %v2055_v7 = vmov 0.0   ;;  %s2826_s0 = inlined_call_operand.vmem [shape: f32[16,128], index: 0, kind: input, shape index: {}]   ;;  %s2827_s1 = inlined_call_operand.vmem [shape: f32[4,128], index: 1, kind: input, shape index: {}]   ;;  %s2828_s2 = inlined_call_operand.vmem [shape: f32[608,168], index: 2, kind: input, shape index: {}]   ;;  %s2829_s3 = inlined_call_operand.vmem [shape: f32[464,1], index: 3, kind: input, shape index: {}]   ;;  %s2830_s4 = inlined_call_operand.hbm [shape: f32[16,128], index: 4, kind: output, shape index: {}]  }
   0x1   :  { %v44_v0 = vld [vmem:[%s2829_s3 + $0x10] sm:$0xff]  ;;  %v42_v1 = vld [vmem:[%s2829_s3] sm:$0xff]  ;;  %2007 = vset.pattern.permute.xlu1 %v2052_v3  ;;  %2006 = vset.pattern.permute.xlu0 %v2052_v3  ;;  %v19_v4 = vld [vmem:[%s2826_s0 + $0x8] sm:$0xff]  ;;  %vm168_vm1 = vcmask 130048  }
   0x2   :  { %v18_v2 = vld [vmem:[%s2826_s0] sm:$0xff]  ;;  %1885 = vmatprep.subr.bf16.mxu0 %v2053_v5  ;;  %75 = vperm.xlu1 %2007, %v44_v0   ;;  %v45_v8 = vld [vmem:[%s2829_s3 + $0x18] sm:$0xff]  ;;  %v43_v9 = vld [vmem:[%s2829_s3 + $0x8] sm:$0xff] }
   0x3   :  { %v1886_v6 = vpack.c.bf16 %v19_v4, %v18_v2  ;;  %65 = vperm.xlu0 %2006, %v42_v1   ;;  %1782 = vmatprep.mubr.msk.f32.mxu0 %vm2054_vm0, %v2055_v7  ;;  %v21_v10 = vld [vmem:[%s2828_s2] sm:$0xff]  ;;  %v47_v11 = vld [vmem:[%s2829_s3 + $0x28] sm:$0xff]  ;;  %v22_v13 = vld [vmem:[%s2828_s2 + $0x10] sm:$0xff] }
   0x4   :  { %1888 = vmatprep.subr.bf16.mxu1 %v2053_v5  ;;  %v46_v12 = vld [vmem:[%s2829_s3 + $0x20] sm:$0xff]  ;;  %v49_v14 = vld [vmem:[%s2829_s3 + $0x38] sm:$0xff]  ;;  %v48_v15 = vld [vmem:[%s2829_s3 + $0x30] sm:$0xff] }
   0x5   :  { %1887 = vmatpush3.bf16.msra.mxu0 %v1886_v6  ;;  %v23_v16 = vld [vmem:[%s2828_s2 + $0x20] sm:$0xff]  ;;  %v51_v17 = vld [vmem:[%s2829_s3 + $0x48] sm:$0xff]  ;;  %v24_v19 = vld [vmem:[%s2828_s2 + $0x30] sm:$0xff] }
   0x6   :  { %1918 = vmatprep.subr.bf16.mxu0 %v2053_v5  ;;  %80 = vperm.xlu1 %2007, %v45_v8   ;;  %v50_v18 = vld [vmem:[%s2829_s3 + $0x40] sm:$0xff]  ;;  %v53_v20 = vld [vmem:[%s2829_s3 + $0x58] sm:$0xff]  ;;  %v52_v21 = vld [vmem:[%s2829_s3 + $0x50] sm:$0xff] }
   0x7   :  { %70 = vperm.xlu0 %2006, %v43_v9   ;;  %v25_v22 = vld [vmem:[%s2828_s2 + $0x40] sm:$0xff]  ;;  %v55_v23 = vld [vmem:[%s2829_s3 + $0x68] sm:$0xff]  ;;  %v26_v25 = vld [vmem:[%s2828_s2 + $0x50] sm:$0xff] }
   0x8   :  { %1783 = vmatmul.mubr.msk.f32.vlgmr.msra.gmra.mrb[0].mxu0 %vm168_vm1, %v21_v10  ;;  %v54_v24 = vld [vmem:[%s2829_s3 + $0x60] sm:$0xff]  ;;  %v57_v26 = vld [vmem:[%s2829_s3 + $0x78] sm:$0xff] }
   0x9   :  { %1785 = vmatprep.mubr.msk.f32.mxu0 %vm2054_vm0, %v2055_v7 }
   0xa   :  { %90 = vperm.xlu1 %2007, %v47_v11  }
   0xb   :  { %85 = vperm.xlu0 %2006, %v46_v12  }
   0xc   :  { %1786 = vmatmul.mubr.msk.f32.gmra.mrb[2].mxu0 %vm168_vm1, %v22_v13 }
   0xd   :  { %1788 = vmatprep.mubr.msk.f32.mxu0 %vm2054_vm0, %v2055_v7 }
   0xe   :  { %100 = vperm.xlu1 %2007, %v49_v14  }
   0xf   :  { %95 = vperm.xlu0 %2006, %v48_v15  }
  0x10   :  { %1789 = vmatmul.mubr.msk.f32.gmra.mrb[4].mxu0 %vm168_vm1, %v23_v16 }
  0x11   :  { %1791 = vmatprep.mubr.msk.f32.mxu0 %vm2054_vm0, %v2055_v7 }
  0x12   :  { %110 = vperm.xlu1 %2007, %v51_v17  }
  0x13   :  { %105 = vperm.xlu0 %2006, %v50_v18  }
  0x14   :  { %1792 = vmatmul.mubr.msk.f32.gmra.mrb[6].mxu0 %vm168_vm1, %v24_v19 }
  0x15   :  { %1794 = vmatprep.mubr.msk.f32.mxu0 %vm2054_vm0, %v2055_v7 }
  0x16   :  { %120 = vperm.xlu1 %2007, %v53_v20  }
  0x17   :  { %115 = vperm.xlu0 %2006, %v52_v21  }
  0x18   :  { %1795 = vmatmul.mubr.msk.f32.gmra.mrb[8].mxu0 %vm168_vm1, %v25_v22 }
  0x19   :  { %1797 = vmatprep.mubr.msk.f32.mxu0 %vm2054_vm0, %v2055_v7 }
  0x1a   :  { %130 = vperm.xlu1 %2007, %v55_v23  }
  0x1b   :  { %125 = vperm.xlu0 %2006, %v54_v24  }
  0x1c   :  { %1798 = vmatmul.mubr.msk.f32.gmra.mrb[10].mxu0 %vm168_vm1, %v26_v25 }
  0x1d   :  { %9 = vsyncpa [#allocation3], 0  ;;  %1800 = vmatprep.mubr.msk.f32.mxu0 %vm2054_vm0, %v2055_v7  ;;  %v56_v27 = vld [vmem:[%s2829_s3 + $0x70] sm:$0xff]  ;;  %v27_v28 = vld [vmem:[%s2828_s2 + $0x60] sm:$0xff]  ;;  %vm459_vm2 = vcmask 326656   ;;  %vm1556_vm3 = vcmask 31744  }
  0x1e   :  { %140 = vperm.xlu1 %2007, %v57_v26   ;;  %v59_v29 = vld [vmem:[%s2829_s3 + $0x88] sm:$0xff]  ;;  %v58_v30 = vld [vmem:[%s2829_s3 + $0x80] sm:$0xff]  ;;  %v28_v31 = vld [vmem:[%s2828_s2 + $0x70] sm:$0xff]  ;;  %vm1522_vm5 = vcmask 1043456   ;;  %s2056_s6 = smov [#allocation2]  }
  0x1f   :  { %135 = vperm.xlu0 %2006, %v56_v27   ;;  %v61_v32 = vld [vmem:[%s2829_s3 + $0x98] sm:$0xff]  ;;  %v60_v33 = vld [vmem:[%s2829_s3 + $0x90] sm:$0xff]  ;;  %v29_v34 = vld [vmem:[%s2828_s2 + $0x80] sm:$0xff]  ;;  %s1648_s7 = sshll.u32 %s2056_s6, 4  ;;  %s1649_s7 = int_to_ptr.vmem [resolvable:$true] %s1648_s7 }
  0x20   :  { %1801 = vmatmul.mubr.msk.f32.gmra.mrb[12].mxu0 %vm168_vm1, %v27_v28  ;;  %v932_v35 = vld [vmem:[%s2829_s3 + $0xa8] sm:$0xff]  ;;  %v62_v36 = vld [vmem:[%s2829_s3 + $0xa0] sm:$0xff]  ;;  %v30_v37 = vld [vmem:[%s2828_s2 + $0x90] sm:$0xff]  ;;  %s2028_s8 = scalar_lea.vmem %s1649_s7, 256  ;;  %p2033_p1 = scmp.lt.s32.totalorder %s1649_s7, %s1649_s7 }
  0x21   :  { %1803 = vmatprep.mubr.msk.f32.mxu0 %vm2054_vm0, %v2055_v7  ;;  %v934_v38 = vld [vmem:[%s2829_s3 + $0xb8] sm:$0xff]  ;;  %v933_v39 = vld [vmem:[%s2829_s3 + $0xb0] sm:$0xff]  ;;  %v31_v40 = vld [vmem:[%s2828_s2 + $0xa0] sm:$0xff]  ;;  %p2029_p0 = scmp.ne.s32.totalorder %s1649_s7, %s2028_s8  ;;  %p2034_p2 = scmp.lt.s32.totalorder %s2028_s8, %s2028_s8 }
  0x22   :  { %150 = vperm.xlu1 %2007, %v59_v29   ;;  %v936_v41 = vld [vmem:[%s2829_s3 + $0xc8] sm:$0xff]  ;;  %v935_v42 = vld [vmem:[%s2829_s3 + $0xc0] sm:$0xff]  ;;  %v32_v43 = vld [vmem:[%s2828_s2 + $0xb0] sm:$0xff] }
  0x23   :  { %145 = vperm.xlu0 %2006, %v58_v30   ;;  %v938_v44 = vld [vmem:[%s2829_s3 + $0xd8] sm:$0xff]  ;;  %v937_v45 = vld [vmem:[%s2829_s3 + $0xd0] sm:$0xff]  ;;  %v33_v46 = vld [vmem:[%s2828_s2 + $0xc0] sm:$0xff]  ;;  %p2035_p3 = por %p2034_p2, %p2033_p1 }
  0x24   :  { %1804 = vmatmul.mubr.msk.f32.gmra.mrb[14].mxu0 %vm168_vm1, %v28_v31  ;;  %v940_v47 = vld [vmem:[%s2829_s3 + $0xe8] sm:$0xff]  ;;  %v939_v48 = vld [vmem:[%s2829_s3 + $0xe0] sm:$0xff]  ;;  %v34_v49 = vld [vmem:[%s2828_s2 + $0xd0] sm:$0xff] }
  0x25   :  { %1806 = vmatprep.mubr.msk.f32.mxu0 %vm2054_vm0, %v2055_v7  ;;  %v942_v50 = vld [vmem:[%s2829_s3 + $0xf8] sm:$0xff]  ;;  %v941_v51 = vld [vmem:[%s2829_s3 + $0xf0] sm:$0xff]  ;;  %v35_v52 = vld [vmem:[%s2828_s2 + $0xe0] sm:$0xff]  ;;  %p2036_p4 = pnand %p2035_p3, %p2029_p0 }
  0x26   :  { %160 = vperm.xlu1 %2007, %v61_v32   ;;  %v944_v53 = vld [vmem:[%s2829_s3 + $0x108] sm:$0xff]  ;;  %v943_v54 = vld [vmem:[%s2829_s3 + $0x100] sm:$0xff]  ;;  %v36_v55 = vld [vmem:[%s2828_s2 + $0xf0] sm:$0xff] }
  0x27   :  { %155 = vperm.xlu0 %2006, %v60_v33   ;;  %v946_v56 = vld [vmem:[%s2829_s3 + $0x118] sm:$0xff]  ;;  %v945_v57 = vld [vmem:[%s2829_s3 + $0x110] sm:$0xff]  ;;  %v37_v58 = vld [vmem:[%s2828_s2 + $0x100] sm:$0xff] }
  0x28   :  { %1807 = vmatmul.mubr.msk.f32.gmra.mrb[16].mxu0 %vm168_vm1, %v29_v34  ;;  %v948_v59 = vld [vmem:[%s2829_s3 + $0x128] sm:$0xff]  ;;  %v947_v60 = vld [vmem:[%s2829_s3 + $0x120] sm:$0xff]  ;;  %v38_v61 = vld [vmem:[%s2828_s2 + $0x110] sm:$0xff] }
  0x29   :  { %1809 = vmatprep.mubr.msk.f32.mxu0 %vm2054_vm0, %v2055_v7  ;;  %v1108_v62 = vld [vmem:[%s2829_s3 + $0x138] sm:$0xff]  ;;  %v949_v63 = vld [vmem:[%s2829_s3 + $0x130] sm:$0xff]  ;;  %v39_v0 = vld [vmem:[%s2828_s2 + $0x120] sm:$0xff] }
  0x2a   :  { %952 = vperm.xlu1 %2007, %v932_v35   ;;  %v1110_v1 = vld [vmem:[%s2829_s3 + $0x148] sm:$0xff]  ;;  %v1109_v2 = vld [vmem:[%s2829_s3 + $0x140] sm:$0xff]  ;;  %v40_v3 = vld [vmem:[%s2828_s2 + $0x130] sm:$0xff] }
  0x2b   :  { %165 = vperm.xlu0 %2006, %v62_v36   ;;  %v1112_v4 = vld [vmem:[%s2829_s3 + $0x158] sm:$0xff]  ;;  %v1111_v6 = vld [vmem:[%s2829_s3 + $0x150] sm:$0xff]  ;;  %v41_v8 = vld [vmem:[%s2828_s2 + $0x140] sm:$0xff] }
  0x2c   :  { %1810 = vmatmul.mubr.msk.f32.gmra.mrb[18].mxu0 %vm168_vm1, %v30_v37  ;;  %v1114_v9 = vld [vmem:[%s2829_s3 + $0x168] sm:$0xff]  ;;  %v1113_v10 = vld [vmem:[%s2829_s3 + $0x160] sm:$0xff]  ;;  %v1116_v11 = vld [vmem:[%s2829_s3 + $0x178] sm:$0xff] }
  0x2d   :  { %1812 = vmatprep.mubr.msk.f32.mxu0 %vm2054_vm0, %v2055_v7  ;;  %v1115_v12 = vld [vmem:[%s2829_s3 + $0x170] sm:$0xff]  ;;  %v1118_v13 = vld [vmem:[%s2829_s3 + $0x188] sm:$0xff]  ;;  %v1117_v14 = vld [vmem:[%s2829_s3 + $0x180] sm:$0xff] }
  0x2e   :  { %962 = vperm.xlu1 %2007, %v934_v38   ;;  %v1120_v15 = vld [vmem:[%s2829_s3 + $0x198] sm:$0xff]  ;;  %v1119_v16 = vld [vmem:[%s2829_s3 + $0x190] sm:$0xff]  ;;  %v1122_v17 = vld [vmem:[%s2829_s3 + $0x1a8] sm:$0xff] }
  0x2f   :  { %957 = vperm.xlu0 %2006, %v933_v39   ;;  %v1121_v18 = vld [vmem:[%s2829_s3 + $0x1a0] sm:$0xff]  ;;  %v1414_v19 = vld [vmem:[%s2829_s3 + $0x1b8] sm:$0xff]  ;;  %v1123_v20 = vld [vmem:[%s2829_s3 + $0x1b0] sm:$0xff] }
  0x30   :  { %1813 = vmatmul.mubr.msk.f32.gmra.mrb[20].mxu0 %vm168_vm1, %v31_v40  ;;  %v1545_v21 = vld [vmem:[%s2829_s3 + $0x1c8] sm:$0xff]  ;;  %v1544_v22 = vld [vmem:[%s2829_s3 + $0x1c0] sm:$0xff]  ;;  %v424_v23 = vld [vmem:[%s2828_s2 + $0x158] sm:$0xff] }
  0x31   :  { %1815 = vmatprep.mubr.msk.f32.mxu0 %vm2054_vm0, %v2055_v7  ;;  %v670_v24 = vld [vmem:[%s2828_s2 + $0x278] sm:$0xff]  ;;  %1680 = vmatprep.mubr.msk.f32.mxu1 %vm459_vm2, %v424_v23 }
  0x32   :  { %972 = vperm.xlu1 %2007, %v936_v41  }
  0x33   :  { %967 = vperm.xlu0 %2006, %v935_v42  }
  0x34   :  { %1816 = vmatmul.mubr.msk.f32.gmra.mrb[22].mxu0 %vm168_vm1, %v32_v43 }
  0x35   :  { %1818 = vmatprep.mubr.msk.f32.mxu0 %vm2054_vm0, %v2055_v7 }
  0x36   :  { %982 = vperm.xlu1 %2007, %v938_v44  }
  0x37   :  { %977 = vperm.xlu0 %2006, %v937_v45  }
  0x38   :  { %1819 = vmatmul.mubr.msk.f32.gmra.mrb[24].mxu0 %vm168_vm1, %v33_v46 }
  0x39   :  { %1821 = vmatprep.mubr.msk.f32.mxu0 %vm2054_vm0, %v2055_v7 }
  0x3a   :  { %992 = vperm.xlu1 %2007, %v940_v47  }
  0x3b   :  { %987 = vperm.xlu0 %2006, %v939_v48  }
  0x3c   :  { %1822 = vmatmul.mubr.msk.f32.gmra.mrb[26].mxu0 %vm168_vm1, %v34_v49 }
  0x3d   :  { %1824 = vmatprep.mubr.msk.f32.mxu0 %vm2054_vm0, %v2055_v7 }
  0x3e   :  { %1002 = vperm.xlu1 %2007, %v942_v50  }
  0x3f   :  { %997 = vperm.xlu0 %2006, %v941_v51  }
  0x40   :  { %1825 = vmatmul.mubr.msk.f32.gmra.mrb[28].mxu0 %vm168_vm1, %v35_v52 }
  0x41   :  { %1827 = vmatprep.mubr.msk.f32.mxu0 %vm2054_vm0, %v2055_v7 }
  0x42   :  { %1012 = vperm.xlu1 %2007, %v944_v53  }
  0x43   :  { %1007 = vperm.xlu0 %2006, %v943_v54  }
  0x44   :  { %1828 = vmatmul.mubr.msk.f32.gmra.mrb[30].mxu0 %vm168_vm1, %v36_v55 }
  0x45   :  { %1830 = vmatprep.mubr.msk.f32.mxu0 %vm2054_vm0, %v2055_v7 }
  0x46   :  { %1022 = vperm.xlu1 %2007, %v946_v56  }
  0x47   :  { %1017 = vperm.xlu0 %2006, %v945_v57  }
  0x48   :  { %1831 = vmatmul.mubr.msk.f32.gmra.mrb[32].mxu0 %vm168_vm1, %v37_v58 }
  0x49   :  { %1833 = vmatprep.mubr.msk.f32.mxu0 %vm2054_vm0, %v2055_v7 }
  0x4a   :  { %1032 = vperm.xlu1 %2007, %v948_v59  }
  0x4b   :  { %1027 = vperm.xlu0 %2006, %v947_v60  }
  0x4c   :  { %1834 = vmatmul.mubr.msk.f32.gmra.mrb[34].mxu0 %vm168_vm1, %v38_v61 }
  0x4d   :  { %1836 = vmatprep.mubr.msk.f32.mxu0 %vm2054_vm0, %v2055_v7 }
  0x4e   :  { %1126 = vperm.xlu1 %2007, %v1108_v62  }
  0x4f   :  { %1037 = vperm.xlu0 %2006, %v949_v63  }
  0x50   :  { %1837 = vmatmul.mubr.msk.f32.gmra.mrb[36].mxu0 %vm168_vm1, %v39_v0 }
  0x51   :  { %1839 = vmatprep.mubr.msk.f32.mxu0 %vm2054_vm0, %v2055_v7 }
  0x52   :  { %1136 = vperm.xlu1 %2007, %v1110_v1  }
  0x53   :  { %1131 = vperm.xlu0 %2006, %v1109_v2  }
  0x54   :  { %1840 = vmatmul.mubr.msk.f32.gmra.mrb[38].mxu0 %vm168_vm1, %v40_v3 }
  0x55   :  { %1842 = vmatprep.mubr.msk.f32.mxu0 %vm2054_vm0, %v2055_v7 }
  0x56   :  { %1146 = vperm.xlu1 %2007, %v1112_v4  }
  0x57   :  { %1141 = vperm.xlu0 %2006, %v1111_v6  }
  0x58   :  { %1843 = vmatmul.mubr.msk.f32.gmra.mrb[40].mxu0 %vm168_vm1, %v41_v8 }
  0x59   :  { %1698 = vmatprep.mubr.msk.f32.mxu0 %vm459_vm2, %v670_v24 }
  0x5a   :  { %1156 = vperm.xlu1 %2007, %v1114_v9  }
  0x5b   :  { %1151 = vperm.xlu0 %2006, %v1113_v10  }
  0x5e   :  { %1166 = vperm.xlu1 %2007, %v1116_v11  }
  0x5f   :  { %1161 = vperm.xlu0 %2006, %v1115_v12  }
  0x62   :  { %1176 = vperm.xlu1 %2007, %v1118_v13  }
  0x63   :  { %1171 = vperm.xlu0 %2006, %v1117_v14  }
  0x66   :  { %1186 = vperm.xlu1 %2007, %v1120_v15  }
  0x67   :  { %1181 = vperm.xlu0 %2006, %v1119_v16  }
  0x6a   :  { %1196 = vperm.xlu1 %2007, %v1122_v17  }
  0x6b   :  { %1191 = vperm.xlu0 %2006, %v1121_v18  }
  0x6e   :  { %1417 = vperm.xlu1 %2007, %v1414_v19  }
  0x6f   :  { %1201 = vperm.xlu0 %2006, %v1123_v20  }
  0x72   :  { %1553 = vperm.xlu1 %2007, %v1545_v21  }
  0x73   :  { %1548 = vperm.xlu0 %2006, %v1544_v22  }
  0x81   :  { %v76_v33 = vpop.permute.xlu1 %75 }
  0x82   :  { %v66_v25 = vpop.permute.xlu0 %65 }
  0x85   :  { %v81_v40 = vpop.permute.xlu1 %80 }
  0x86   :  { %v71_v29 = vpop.permute.xlu0 %70 }
  0x89   :  { %v91_v51 = vpop.permute.xlu1 %90 }
  0x8a   :  { %v86_v49 = vpop.permute.xlu0 %85 }
  0x8d   :  { %v101_v62 = vpop.permute.xlu1 %100 }
  0x8e   :  { %v96_v60 = vpop.permute.xlu0 %95 }
  0x91   :  { %v111_v11 = vpop.permute.xlu1 %110 }
  0x92   :  { %v106_v9 = vpop.permute.xlu0 %105 }
  0x95   :  { %v121_v22 = vpop.permute.xlu1 %120 }
  0x96   :  { %v116_v20 = vpop.permute.xlu0 %115 }
  0xdb   :  { %v298_v26 = vpop.f32.mrb[0].mxu0 }
  0xdc   :  { %v1784_v27 = vpop.f32.mrb[1].mxu0  ;;  %v299_v28 = vadd.f32 %v298_v26, %v66_v25 }
  0xde   :  { %v402_v34 = vmax.f32 %v299_v28, 0.0 }
  0xdf   :  { %v303_v30 = vpop.f32.mrb[2].mxu0 }
  0xe0   :  { %v304_v31 = vadd.f32 %v303_v30, %v71_v29  ;;  %v1787_v32 = vpop.f32.mrb[3].mxu0 }
  0xe2   :  { %v403_v35 = vmax.f32 %v304_v31, 0.0  ;;  %v126_v31 = vpop.permute.xlu0 %125 }
  0xe3   :  { %v308_v36 = vpop.f32.mrb[4].mxu0 }
  0xe4   :  { %v1790_v37 = vpop.f32.mrb[5].mxu0  ;;  %v1889_v38 = vpack.c.bf16 %v403_v35, %v402_v34  ;;  %v309_v39 = vadd.f32 %v308_v36, %v76_v33  ;;  %v131_v33 = vpop.permute.xlu1 %130 }
  0xe6   :  { %1890 = vmatpush1.bf16.msra.mxu1 %v1889_v38  ;;  %1920 = vmatpush1.bf16.msra.mxu0 %v1889_v38  ;;  %v404_v44 = vmax.f32 %v309_v39, 0.0 }
  0xe7   :  { %v313_v41 = vpop.f32.mrb[6].mxu0  ;;  %1891 = vmatprep.subr.bf16.mxu1 %v2053_v5  ;;  %1921 = vmatprep.subr.bf16.mxu0 %v2053_v5 }
  0xe8   :  { %v314_v42 = vadd.f32 %v313_v41, %v81_v40  ;;  %v1793_v43 = vpop.f32.mrb[7].mxu0 }
  0xea   :  { %v405_v45 = vmax.f32 %v314_v42, 0.0  ;;  %v136_v42 = vpop.permute.xlu0 %135 }
  0xeb   :  { %v318_v46 = vpop.f32.mrb[8].mxu0 }
  0xec   :  { %v1892_v47 = vpack.c.bf16 %v405_v45, %v404_v44  ;;  %v1796_v48 = vpop.f32.mrb[9].mxu0  ;;  %v319_v50 = vadd.f32 %v318_v46, %v86_v49  ;;  %v141_v44 = vpop.permute.xlu1 %140 }
  0xee   :  { %1893 = vmatpush1.bf16.msra.mxu1 %v1892_v47  ;;  %1923 = vmatpush1.bf16.msra.mxu0 %v1892_v47  ;;  %v406_v55 = vmax.f32 %v319_v50, 0.0 }
  0xef   :  { %v323_v52 = vpop.f32.mrb[10].mxu0  ;;  %1894 = vmatprep.subr.bf16.mxu1 %v2053_v5  ;;  %1924 = vmatprep.subr.bf16.mxu0 %v2053_v5 }
  0xf0   :  { %v324_v53 = vadd.f32 %v323_v52, %v91_v51  ;;  %v1799_v54 = vpop.f32.mrb[11].mxu0 }
  0xf2   :  { %v407_v56 = vmax.f32 %v324_v53, 0.0  ;;  %v146_v53 = vpop.permute.xlu0 %145 }
  0xf3   :  { %v328_v57 = vpop.f32.mrb[12].mxu0 }
  0xf4   :  { %v1895_v58 = vpack.c.bf16 %v407_v56, %v406_v55  ;;  %v1802_v59 = vpop.f32.mrb[13].mxu0  ;;  %v329_v61 = vadd.f32 %v328_v57, %v96_v60  ;;  %v151_v55 = vpop.permute.xlu1 %150 }
  0xf6   :  { %1896 = vmatpush1.bf16.msra.mxu1 %v1895_v58  ;;  %1926 = vmatpush1.bf16.msra.mxu0 %v1895_v58  ;;  %v408_v2 = vmax.f32 %v329_v61, 0.0 }
  0xf7   :  { %v333_v63 = vpop.f32.mrb[14].mxu0  ;;  %1897 = vmatprep.subr.bf16.mxu1 %v2053_v5  ;;  %1927 = vmatprep.subr.bf16.mxu0 %v2053_v5 }
  0xf8   :  { %v334_v0 = vadd.f32 %v333_v63, %v101_v62  ;;  %v1805_v1 = vpop.f32.mrb[15].mxu0 }
  0xfa   :  { %v409_v3 = vmax.f32 %v334_v0, 0.0  ;;  %v156_v0 = vpop.permute.xlu0 %155 }
  0xfb   :  { %v338_v4 = vpop.f32.mrb[16].mxu0 }
  0xfc   :  { %v1898_v6 = vpack.c.bf16 %v409_v3, %v408_v2  ;;  %v1808_v8 = vpop.f32.mrb[17].mxu0  ;;  %v339_v10 = vadd.f32 %v338_v4, %v106_v9  ;;  %v161_v2 = vpop.permute.xlu1 %160 }
  0xfe   :  { %1899 = vmatpush1.bf16.msra.mxu1 %v1898_v6  ;;  %1929 = vmatpush1.bf16.msra.mxu0 %v1898_v6  ;;  %v410_v15 = vmax.f32 %v339_v10, 0.0  ;;  %v166_v10 = vpop.permute.xlu0 %165 }
  0xff   :  { %v343_v12 = vpop.f32.mrb[18].mxu0  ;;  %1900 = vmatprep.subr.bf16.mxu1 %v2053_v5  ;;  %1930 = vmatprep.subr.bf16.mxu0 %v2053_v5 }
 0x100   :  { %v344_v13 = vadd.f32 %v343_v12, %v111_v11  ;;  %v1811_v14 = vpop.f32.mrb[19].mxu0 }
 0x102   :  { %v411_v16 = vmax.f32 %v344_v13, 0.0 }
 0x103   :  { %v348_v17 = vpop.f32.mrb[20].mxu0 }
 0x104   :  { %v1901_v18 = vpack.c.bf16 %v411_v16, %v410_v15  ;;  %v1814_v19 = vpop.f32.mrb[21].mxu0  ;;  %v349_v21 = vadd.f32 %v348_v17, %v116_v20  ;;  %v423_v16 = vld [vmem:[%s2828_s2 + $0x150] sm:$0xff]  ;;  %v425_v20 = vld [vmem:[%s2828_s2 + $0x160] sm:$0xff] }
 0x105   :  { %v669_v17 = vld [vmem:[%s2828_s2 + $0x270] sm:$0xff]  ;;  %v672_v19 = vld [vmem:[%s2828_s2 + $0x288] sm:$0xff] }
 0x106   :  { %1902 = vmatpush1.bf16.msra.mxu1 %v1901_v18  ;;  %1932 = vmatpush1.bf16.msra.mxu0 %v1901_v18  ;;  %v412_v26 = vmax.f32 %v349_v21, 0.0  ;;  %v426_v18 = vld [vmem:[%s2828_s2 + $0x168] sm:$0xff]  ;;  %v671_v21 = vld [vmem:[%s2828_s2 + $0x280] sm:$0xff] }
 0x107   :  { %v353_v23 = vpop.f32.mrb[22].mxu0  ;;  %1903 = vmatprep.subr.bf16.mxu1 %v2053_v5  ;;  %1933 = vmatprep.subr.bf16.mxu0 %v2053_v5 }
 0x108   :  { %v354_v24 = vadd.f32 %v353_v23, %v121_v22  ;;  %v1817_v25 = vpop.f32.mrb[23].mxu0  ;;  %v428_v22 = vld [vmem:[%s2828_s2 + $0x178] sm:$0xff] }
 0x109   :  { %v674_v23 = vld [vmem:[%s2828_s2 + $0x298] sm:$0xff]  ;;  %v673_v25 = vld [vmem:[%s2828_s2 + $0x290] sm:$0xff] }
 0x10a   :  { %v413_v27 = vmax.f32 %v354_v24, 0.0  ;;  %v427_v24 = vld [vmem:[%s2828_s2 + $0x170] sm:$0xff] }
 0x10b   :  { %v358_v28 = vpop.f32.mrb[24].mxu0 }
 0x10c   :  { %v1904_v29 = vpack.c.bf16 %v413_v27, %v412_v26  ;;  %v1820_v30 = vpop.f32.mrb[25].mxu0  ;;  %v359_v32 = vadd.f32 %v358_v28, %v126_v31  ;;  %v430_v26 = vld [vmem:[%s2828_s2 + $0x188] sm:$0xff]  ;;  %v429_v28 = vld [vmem:[%s2828_s2 + $0x180] sm:$0xff]  ;;  %v678_v31 = vld [vmem:[%s2828_s2 + $0x2b8] sm:$0xff] }
 0x10d   :  { %v676_v27 = vld [vmem:[%s2828_s2 + $0x2a8] sm:$0xff]  ;;  %v432_v30 = vld [vmem:[%s2828_s2 + $0x198] sm:$0xff] }
 0x10e   :  { %1905 = vmatpush1.bf16.msra.mxu1 %v1904_v29  ;;  %1935 = vmatpush1.bf16.msra.mxu0 %v1904_v29  ;;  %v414_v37 = vmax.f32 %v359_v32, 0.0  ;;  %v675_v29 = vld [vmem:[%s2828_s2 + $0x2a0] sm:$0xff]  ;;  %v431_v32 = vld [vmem:[%s2828_s2 + $0x190] sm:$0xff] }
 0x10f   :  { %v363_v34 = vpop.f32.mrb[26].mxu0  ;;  %1906 = vmatprep.subr.bf16.mxu1 %v2053_v5  ;;  %1936 = vmatprep.subr.bf16.mxu0 %v2053_v5 }
 0x110   :  { %v364_v35 = vadd.f32 %v363_v34, %v131_v33  ;;  %v1823_v36 = vpop.f32.mrb[27].mxu0  ;;  %v677_v33 = vld [vmem:[%s2828_s2 + $0x2b0] sm:$0xff]  ;;  %v434_v34 = vld [vmem:[%s2828_s2 + $0x1a8] sm:$0xff] }
 0x111   :  { %v433_v36 = vld [vmem:[%s2828_s2 + $0x1a0] sm:$0xff] }
 0x112   :  { %v415_v38 = vmax.f32 %v364_v35, 0.0  ;;  %v680_v35 = vld [vmem:[%s2828_s2 + $0x2c8] sm:$0xff] }
 0x113   :  { %v368_v39 = vpop.f32.mrb[28].mxu0 }
 0x114   :  { %v1907_v40 = vpack.c.bf16 %v415_v38, %v414_v37  ;;  %v1826_v41 = vpop.f32.mrb[29].mxu0  ;;  %v369_v43 = vadd.f32 %v368_v39, %v136_v42  ;;  %v679_v37 = vld [vmem:[%s2828_s2 + $0x2c0] sm:$0xff]  ;;  %v436_v38 = vld [vmem:[%s2828_s2 + $0x1b8] sm:$0xff]  ;;  %v438_v42 = vld [vmem:[%s2828_s2 + $0x1c8] sm:$0xff] }
 0x115   :  { %v682_v39 = vld [vmem:[%s2828_s2 + $0x2d8] sm:$0xff]  ;;  %v681_v41 = vld [vmem:[%s2828_s2 + $0x2d0] sm:$0xff] }
 0x116   :  { %1908 = vmatpush1.bf16.msra.mxu1 %v1907_v40  ;;  %1938 = vmatpush1.bf16.msra.mxu0 %v1907_v40  ;;  %v416_v48 = vmax.f32 %v369_v43, 0.0  ;;  %v435_v40 = vld [vmem:[%s2828_s2 + $0x1b0] sm:$0xff]  ;;  %v684_v43 = vld [vmem:[%s2828_s2 + $0x2e8] sm:$0xff] }
 0x117   :  { %v373_v45 = vpop.f32.mrb[30].mxu0  ;;  %1909 = vmatprep.subr.bf16.mxu1 %v2053_v5  ;;  %1939 = vmatprep.subr.bf16.mxu0 %v2053_v5 }
 0x118   :  { %v374_v46 = vadd.f32 %v373_v45, %v141_v44  ;;  %v1829_v47 = vpop.f32.mrb[31].mxu0  ;;  %v437_v44 = vld [vmem:[%s2828_s2 + $0x1c0] sm:$0xff] }
 0x119   :  { %v683_v45 = vld [vmem:[%s2828_s2 + $0x2e0] sm:$0xff]  ;;  %v686_v47 = vld [vmem:[%s2828_s2 + $0x2f8] sm:$0xff] }
 0x11a   :  { %v417_v49 = vmax.f32 %v374_v46, 0.0  ;;  %v440_v46 = vld [vmem:[%s2828_s2 + $0x1d8] sm:$0xff] }
 0x11b   :  { %v378_v50 = vpop.f32.mrb[32].mxu0 }
 0x11c   :  { %v1910_v51 = vpack.c.bf16 %v417_v49, %v416_v48  ;;  %v1832_v52 = vpop.f32.mrb[33].mxu0  ;;  %v379_v54 = vadd.f32 %v378_v50, %v146_v53  ;;  %v439_v48 = vld [vmem:[%s2828_s2 + $0x1d0] sm:$0xff]  ;;  %v442_v50 = vld [vmem:[%s2828_s2 + $0x1e8] sm:$0xff]  ;;  %v687_v53 = vld [vmem:[%s2828_s2 + $0x300] sm:$0xff] }
 0x11d   :  { %v685_v49 = vld [vmem:[%s2828_s2 + $0x2f0] sm:$0xff]  ;;  %v441_v52 = vld [vmem:[%s2828_s2 + $0x1e0] sm:$0xff] }
 0x11e   :  { %1911 = vmatpush1.bf16.msra.mxu1 %v1910_v51  ;;  %1941 = vmatpush1.bf16.msra.mxu0 %v1910_v51  ;;  %v418_v59 = vmax.f32 %v379_v54, 0.0  ;;  %v688_v51 = vld [vmem:[%s2828_s2 + $0x308] sm:$0xff]  ;;  %v444_v54 = vld [vmem:[%s2828_s2 + $0x1f8] sm:$0xff] }
 0x11f   :  { %v383_v56 = vpop.f32.mrb[34].mxu0  ;;  %1912 = vmatprep.subr.bf16.mxu1 %v2053_v5  ;;  %1942 = vmatprep.subr.bf16.mxu0 %v2053_v5 }
 0x120   :  { %v384_v57 = vadd.f32 %v383_v56, %v151_v55  ;;  %v1835_v58 = vpop.f32.mrb[35].mxu0  ;;  %v690_v55 = vld [vmem:[%s2828_s2 + $0x318] sm:$0xff]  ;;  %v443_v56 = vld [vmem:[%s2828_s2 + $0x1f0] sm:$0xff] }
 0x121   :  { %v446_v58 = vld [vmem:[%s2828_s2 + $0x208] sm:$0xff] }
 0x122   :  { %v419_v60 = vmax.f32 %v384_v57, 0.0  ;;  %v689_v57 = vld [vmem:[%s2828_s2 + $0x310] sm:$0xff] }
 0x123   :  { %v388_v61 = vpop.f32.mrb[36].mxu0 }
 0x124   :  { %v1913_v62 = vpack.c.bf16 %v419_v60, %v418_v59  ;;  %v1838_v63 = vpop.f32.mrb[37].mxu0  ;;  %v389_v1 = vadd.f32 %v388_v61, %v156_v0  ;;  %v692_v59 = vld [vmem:[%s2828_s2 + $0x328] sm:$0xff]  ;;  %v445_v60 = vld [vmem:[%s2828_s2 + $0x200] sm:$0xff]  ;;  %v447_v0 = vld [vmem:[%s2828_s2 + $0x210] sm:$0xff] }
 0x125   :  { %v691_v61 = vld [vmem:[%s2828_s2 + $0x320] sm:$0xff]  ;;  %v694_v63 = vld [vmem:[%s2828_s2 + $0x338] sm:$0xff] }
 0x126   :  { %1914 = vmatpush1.bf16.msra.mxu1 %v1913_v62  ;;  %1944 = vmatpush1.bf16.msra.mxu0 %v1913_v62  ;;  %v420_v8 = vmax.f32 %v389_v1, 0.0  ;;  %v448_v62 = vld [vmem:[%s2828_s2 + $0x218] sm:$0xff]  ;;  %v693_v1 = vld [vmem:[%s2828_s2 + $0x330] sm:$0xff] }
 0x127   :  { %v393_v3 = vpop.f32.mrb[38].mxu0  ;;  %1915 = vmatprep.subr.bf16.mxu1 %v2053_v5  ;;  %1945 = vmatprep.subr.bf16.mxu0 %v2053_v5 }
 0x128   :  { %v394_v4 = vadd.f32 %v393_v3, %v161_v2  ;;  %v1841_v6 = vpop.f32.mrb[39].mxu0  ;;  %v450_v2 = vld [vmem:[%s2828_s2 + $0x228] sm:$0xff] }
 0x129   :  { %v696_v3 = vld [vmem:[%s2828_s2 + $0x348] sm:$0xff]  ;;  %v695_v6 = vld [vmem:[%s2828_s2 + $0x340] sm:$0xff] }
 0x12a   :  { %v421_v9 = vmax.f32 %v394_v4, 0.0  ;;  %v449_v4 = vld [vmem:[%s2828_s2 + $0x220] sm:$0xff] }
 0x12b   :  { %v398_v11 = vpop.f32.mrb[40].mxu0 }
 0x12c   :  { %v1916_v12 = vpack.c.bf16 %v421_v9, %v420_v8  ;;  %v399_v13 = vadd.f32 %v398_v11, %v166_v10  ;;  %v1844_v14 = vpop.f32.mrb[41].mxu0  ;;  %v452_v8 = vld [vmem:[%s2828_s2 + $0x238] sm:$0xff]  ;;  %v451_v10 = vld [vmem:[%s2828_s2 + $0x230] sm:$0xff] }
 0x12d   :  { %v698_v9 = vld [vmem:[%s2828_s2 + $0x358] sm:$0xff]  ;;  %v697_v11 = vld [vmem:[%s2828_s2 + $0x350] sm:$0xff]  ;;  %v453_v14 = vld [vmem:[%s2828_s2 + $0x240] sm:$0xff] }
 0x12e   :  { %1917 = vmatpush1.bf16.msra.mxu1 %v1916_v12  ;;  %1947 = vmatpush1.bf16.msra.mxu0 %v1916_v12  ;;  %v422_v15 = vmax.f32 %v399_v13, 0.0  ;;  %v454_v12 = vld [vmem:[%s2828_s2 + $0x248] sm:$0xff] }
 0x12f   :  { %554 = vmatprep.subr.mxu1 %v2055_v7  ;;  %799 = vmatprep.subr.mxu0 %v2055_v7  ;;  %v700_v13 = vld [vmem:[%s2828_s2 + $0x368] sm:$0xff] }
 0x132   :  { %555 = vmatpush1.msra.mxu1 %v422_v15  ;;  %800 = vmatpush1.msra.mxu0 %v422_v15  ;;  %v699_v15 = vld [vmem:[%s2828_s2 + $0x360] sm:$0xff] }
 0x133   :  { %579 = vmatmul.mubr.f32.vlgmr.msra.gmra.mrb[0].mxu1 %v423_v16  ;;  %824 = vmatmul.mubr.f32.vlgmr.msra.gmra.mrb[42].mxu0 %v669_v17  ;;  %v456_v16 = vld [vmem:[%s2828_s2 + $0x258] sm:$0xff] }
 0x134   :  { %1681 = vmatprep.mubr.msk.f32.mxu1 %vm459_vm2, %v426_v18  ;;  %1699 = vmatprep.mubr.msk.f32.mxu0 %vm459_vm2, %v672_v19  ;;  %v702_v17 = vld [vmem:[%s2828_s2 + $0x378] sm:$0xff]  ;;  %v455_v18 = vld [vmem:[%s2828_s2 + $0x250] sm:$0xff] }
 0x135   :  { %1948 = vmatprep.subr.bf16.mxu1 %v2053_v5  ;;  %1975 = vmatprep.subr.bf16.mxu0 %v2053_v5  ;;  %v701_v19 = vld [vmem:[%s2828_s2 + $0x370] sm:$0xff] }
 0x137   :  { %584 = vmatmul.mubr.f32.gmra.mrb[2].mxu1 %v425_v20  ;;  %829 = vmatmul.mubr.f32.gmra.mrb[44].mxu0 %v671_v21  ;;  %v458_v20 = vld [vmem:[%s2828_s2 + $0x268] sm:$0xff] }
 0x138   :  { %1682 = vmatprep.mubr.msk.f32.mxu1 %vm459_vm2, %v428_v22  ;;  %1700 = vmatprep.mubr.msk.f32.mxu0 %vm459_vm2, %v674_v23  ;;  %v704_v21 = vld [vmem:[%s2828_s2 + $0x388] sm:$0xff]  ;;  %v457_v22 = vld [vmem:[%s2828_s2 + $0x260] sm:$0xff] }
 0x139   :  { %v703_v23 = vld [vmem:[%s2828_s2 + $0x380] sm:$0xff] }
 0x13b   :  { %589 = vmatmul.mubr.f32.gmra.mrb[4].mxu1 %v427_v24  ;;  %834 = vmatmul.mubr.f32.gmra.mrb[46].mxu0 %v673_v25  ;;  %v1077_v24 = vld [vmem:[%s2828_s2 + $0x398] sm:$0xff] }
 0x13c   :  { %1683 = vmatprep.mubr.msk.f32.mxu1 %vm459_vm2, %v430_v26  ;;  %1701 = vmatprep.mubr.msk.f32.mxu0 %vm459_vm2, %v676_v27 }
 0x13f   :  { %594 = vmatmul.mubr.f32.gmra.mrb[6].mxu1 %v429_v28  ;;  %839 = vmatmul.mubr.f32.gmra.mrb[48].mxu0 %v675_v29 }
 0x140   :  { %1684 = vmatprep.mubr.msk.f32.mxu1 %vm459_vm2, %v432_v30  ;;  %1702 = vmatprep.mubr.msk.f32.mxu0 %vm459_vm2, %v678_v31  ;;  %v953_v30 = vpop.permute.xlu1 %952 }
 0x143   :  { %599 = vmatmul.mubr.f32.gmra.mrb[8].mxu1 %v431_v32  ;;  %844 = vmatmul.mubr.f32.gmra.mrb[50].mxu0 %v677_v33 }
 0x144   :  { %1685 = vmatprep.mubr.msk.f32.mxu1 %vm459_vm2, %v434_v34  ;;  %1703 = vmatprep.mubr.msk.f32.mxu0 %vm459_vm2, %v680_v35 }
 0x147   :  { %604 = vmatmul.mubr.f32.gmra.mrb[10].mxu1 %v433_v36  ;;  %849 = vmatmul.mubr.f32.gmra.mrb[52].mxu0 %v679_v37  ;;  %v958_v37 = vpop.permute.xlu0 %957 }
 0x148   :  { %1686 = vmatprep.mubr.msk.f32.mxu1 %vm459_vm2, %v436_v38  ;;  %1704 = vmatprep.mubr.msk.f32.mxu0 %vm459_vm2, %v682_v39 }
 0x14b   :  { %609 = vmatmul.mubr.f32.gmra.mrb[12].mxu1 %v435_v40  ;;  %854 = vmatmul.mubr.f32.gmra.mrb[54].mxu0 %v681_v41 }
 0x14c   :  { %1687 = vmatprep.mubr.msk.f32.mxu1 %vm459_vm2, %v438_v42  ;;  %1705 = vmatprep.mubr.msk.f32.mxu0 %vm459_vm2, %v684_v43 }
 0x14f   :  { %614 = vmatmul.mubr.f32.gmra.mrb[14].mxu1 %v437_v44  ;;  %859 = vmatmul.mubr.f32.gmra.mrb[56].mxu0 %v683_v45  ;;  %v963_v45 = vpop.permute.xlu1 %962 }
 0x150   :  { %1688 = vmatprep.mubr.msk.f32.mxu1 %vm459_vm2, %v440_v46  ;;  %1706 = vmatprep.mubr.msk.f32.mxu0 %vm459_vm2, %v686_v47 }
 0x153   :  { %619 = vmatmul.mubr.f32.gmra.mrb[16].mxu1 %v439_v48  ;;  %864 = vmatmul.mubr.f32.gmra.mrb[58].mxu0 %v685_v49 }
 0x154   :  { %1689 = vmatprep.mubr.msk.f32.mxu1 %vm459_vm2, %v442_v50  ;;  %1707 = vmatprep.mubr.msk.f32.mxu0 %vm459_vm2, %v688_v51 }
 0x157   :  { %624 = vmatmul.mubr.f32.gmra.mrb[18].mxu1 %v441_v52  ;;  %869 = vmatmul.mubr.f32.gmra.mrb[60].mxu0 %v687_v53  ;;  %v968_v53 = vpop.permute.xlu0 %967 }
 0x158   :  { %1690 = vmatprep.mubr.msk.f32.mxu1 %vm459_vm2, %v444_v54  ;;  %1708 = vmatprep.mubr.msk.f32.mxu0 %vm459_vm2, %v690_v55 }
 0x15b   :  { %629 = vmatmul.mubr.f32.gmra.mrb[20].mxu1 %v443_v56  ;;  %874 = vmatmul.mubr.f32.gmra.mrb[62].mxu0 %v689_v57 }
 0x15c   :  { %1691 = vmatprep.mubr.msk.f32.mxu1 %vm459_vm2, %v446_v58  ;;  %1709 = vmatprep.mubr.msk.f32.mxu0 %vm459_vm2, %v692_v59 }
 0x15f   :  { %634 = vmatmul.mubr.f32.gmra.mrb[22].mxu1 %v445_v60  ;;  %879 = vmatmul.mubr.f32.gmra.mrb[64].mxu0 %v691_v61 }
 0x160   :  { %1692 = vmatprep.mubr.msk.f32.mxu1 %vm459_vm2, %v448_v62  ;;  %1710 = vmatprep.mubr.msk.f32.mxu0 %vm459_vm2, %v694_v63  ;;  %v973_v62 = vpop.permute.xlu1 %972 }
 0x163   :  { %639 = vmatmul.mubr.f32.gmra.mrb[24].mxu1 %v447_v0  ;;  %884 = vmatmul.mubr.f32.gmra.mrb[66].mxu0 %v693_v1 }
 0x164   :  { %1693 = vmatprep.mubr.msk.f32.mxu1 %vm459_vm2, %v450_v2  ;;  %1711 = vmatprep.mubr.msk.f32.mxu0 %vm459_vm2, %v696_v3 }
 0x167   :  { %644 = vmatmul.mubr.f32.gmra.mrb[26].mxu1 %v449_v4  ;;  %889 = vmatmul.mubr.f32.gmra.mrb[68].mxu0 %v695_v6 }
 0x168   :  { %1694 = vmatprep.mubr.msk.f32.mxu1 %vm459_vm2, %v452_v8  ;;  %1712 = vmatprep.mubr.msk.f32.mxu0 %vm459_vm2, %v698_v9  ;;  %v978_v8 = vpop.permute.xlu0 %977 }
 0x16b   :  { %649 = vmatmul.mubr.f32.gmra.mrb[28].mxu1 %v451_v10  ;;  %894 = vmatmul.mubr.f32.gmra.mrb[70].mxu0 %v697_v11 }
 0x16c   :  { %1695 = vmatprep.mubr.msk.f32.mxu1 %vm459_vm2, %v454_v12  ;;  %1713 = vmatprep.mubr.msk.f32.mxu0 %vm459_vm2, %v700_v13 }
 0x16f   :  { %654 = vmatmul.mubr.f32.gmra.mrb[30].mxu1 %v453_v14  ;;  %899 = vmatmul.mubr.f32.gmra.mrb[72].mxu0 %v699_v15 }
 0x170   :  { %1696 = vmatprep.mubr.msk.f32.mxu1 %vm459_vm2, %v456_v16  ;;  %1714 = vmatprep.mubr.msk.f32.mxu0 %vm459_vm2, %v702_v17  ;;  %v983_v17 = vpop.permute.xlu1 %982 }
 0x173   :  { %659 = vmatmul.mubr.f32.gmra.mrb[32].mxu1 %v455_v18  ;;  %904 = vmatmul.mubr.f32.gmra.mrb[74].mxu0 %v701_v19 }
 0x174   :  { %1697 = vmatprep.mubr.msk.f32.mxu1 %vm459_vm2, %v458_v20  ;;  %1715 = vmatprep.mubr.msk.f32.mxu0 %vm459_vm2, %v704_v21 }
 0x177   :  { %664 = vmatmul.mubr.f32.gmra.mrb[34].mxu1 %v457_v22  ;;  %909 = vmatmul.mubr.f32.gmra.mrb[76].mxu0 %v703_v23 }
 0x178   :  { %1877 = vmatprep.mubr.msk.f32.mxu0 %vm2054_vm0, %v2055_v7  ;;  %1716 = vmatprep.mubr.msk.f32.mxu1 %vm168_vm1, %v1077_v24 }
 0x206   :  { %v580_v25 = vpop.f32.mrb[0].mxu1  ;;  %v825_v26 = vpop.f32.mrb[42].mxu0 }
 0x207   :  { %v914_v27 = vmax.f32 %v580_v25, %v825_v26  ;;  %v582_v28 = vpop.f32.mrb[1].mxu1  ;;  %v827_v29 = vpop.f32.mrb[43].mxu0 }
 0x208   :  { %v988_v25 = vpop.permute.xlu0 %987 }
 0x209   :  { %v1040_v33 = vadd.f32 %v953_v30, %v914_v27 }
 0x20a   :  { %v585_v31 = vpop.f32.mrb[2].mxu1  ;;  %v830_v32 = vpop.f32.mrb[44].mxu0 }
 0x20b   :  { %v915_v34 = vmax.f32 %v585_v31, %v830_v32  ;;  %v587_v35 = vpop.f32.mrb[3].mxu1  ;;  %v832_v36 = vpop.f32.mrb[45].mxu0  ;;  %v1058_v40 = vmax.f32 %v1040_v33, 0.0 }
 0x20d   :  { %v1041_v7 = vadd.f32 %v958_v37, %v915_v34  ;;  %v993_v34 = vpop.permute.xlu1 %992 }
 0x20e   :  { %v590_v38 = vpop.f32.mrb[4].mxu1  ;;  %v835_v39 = vpop.f32.mrb[46].mxu0 }
 0x20f   :  { %v1059_v41 = vmax.f32 %v1041_v7, 0.0  ;;  %v916_v42 = vmax.f32 %v590_v38, %v835_v39  ;;  %v592_v43 = vpop.f32.mrb[5].mxu1  ;;  %v837_v44 = vpop.f32.mrb[47].mxu0 }
 0x211   :  { %v1949_v46 = vpack.c.bf16 %v1059_v41, %v1058_v40  ;;  %v1042_v49 = vadd.f32 %v963_v45, %v916_v42  ;;  %v998_v41 = vpop.permute.xlu0 %997 }
 0x212   :  { %v595_v47 = vpop.f32.mrb[6].mxu1  ;;  %v840_v48 = vpop.f32.mrb[48].mxu0 }
 0x213   :  { %v917_v50 = vmax.f32 %v595_v47, %v840_v48  ;;  %v597_v51 = vpop.f32.mrb[7].mxu1  ;;  %v842_v52 = vpop.f32.mrb[49].mxu0  ;;  %1950 = vmatpush1.bf16.msra.mxu1 %v1949_v46  ;;  %v1060_v57 = vmax.f32 %v1042_v49, 0.0 }
 0x214   :  { %1951 = vmatprep.subr.bf16.mxu1 %v2053_v5 }
 0x215   :  { %v1043_v54 = vadd.f32 %v968_v53, %v917_v50  ;;  %v1003_v50 = vpop.permute.xlu1 %1002 }
 0x216   :  { %v600_v55 = vpop.f32.mrb[8].mxu1  ;;  %v845_v56 = vpop.f32.mrb[50].mxu0 }
 0x217   :  { %v1061_v58 = vmax.f32 %v1043_v54, 0.0  ;;  %v918_v59 = vmax.f32 %v600_v55, %v845_v56  ;;  %v602_v60 = vpop.f32.mrb[9].mxu1  ;;  %v847_v61 = vpop.f32.mrb[51].mxu0 }
 0x219   :  { %v1952_v63 = vpack.c.bf16 %v1061_v58, %v1060_v57  ;;  %v1044_v2 = vadd.f32 %v973_v62, %v918_v59  ;;  %v1008_v58 = vpop.permute.xlu0 %1007 }
 0x21a   :  { %v605_v0 = vpop.f32.mrb[10].mxu1  ;;  %v850_v1 = vpop.f32.mrb[52].mxu0 }
 0x21b   :  { %v919_v3 = vmax.f32 %v605_v0, %v850_v1  ;;  %v607_v4 = vpop.f32.mrb[11].mxu1  ;;  %v852_v6 = vpop.f32.mrb[53].mxu0  ;;  %1953 = vmatpush1.bf16.msra.mxu1 %v1952_v63  ;;  %v1062_v12 = vmax.f32 %v1044_v2, 0.0 }
 0x21c   :  { %1954 = vmatprep.subr.bf16.mxu1 %v2053_v5 }
 0x21d   :  { %v1045_v9 = vadd.f32 %v978_v8, %v919_v3  ;;  %v1013_v3 = vpop.permute.xlu1 %1012 }
 0x21e   :  { %v610_v10 = vpop.f32.mrb[12].mxu1  ;;  %v855_v11 = vpop.f32.mrb[54].mxu0 }
 0x21f   :  { %v1063_v13 = vmax.f32 %v1045_v9, 0.0  ;;  %v920_v14 = vmax.f32 %v610_v10, %v855_v11  ;;  %v612_v15 = vpop.f32.mrb[13].mxu1  ;;  %v857_v16 = vpop.f32.mrb[55].mxu0 }
 0x221   :  { %v1955_v18 = vpack.c.bf16 %v1063_v13, %v1062_v12  ;;  %v1046_v21 = vadd.f32 %v983_v17, %v920_v14  ;;  %v1018_v13 = vpop.permute.xlu0 %1017 }
 0x222   :  { %v615_v19 = vpop.f32.mrb[14].mxu1  ;;  %v860_v20 = vpop.f32.mrb[56].mxu0 }
 0x223   :  { %v921_v22 = vmax.f32 %v615_v19, %v860_v20  ;;  %v617_v23 = vpop.f32.mrb[15].mxu1  ;;  %v862_v24 = vpop.f32.mrb[57].mxu0  ;;  %1956 = vmatpush1.bf16.msra.mxu1 %v1955_v18  ;;  %v1064_v29 = vmax.f32 %v1046_v21, 0.0 }
 0x224   :  { %1957 = vmatprep.subr.bf16.mxu1 %v2053_v5 }
 0x225   :  { %v1047_v26 = vadd.f32 %v988_v25, %v921_v22  ;;  %v1023_v22 = vpop.permute.xlu1 %1022 }
 0x226   :  { %v620_v27 = vpop.f32.mrb[16].mxu1  ;;  %v865_v28 = vpop.f32.mrb[58].mxu0 }
 0x227   :  { %v1065_v30 = vmax.f32 %v1047_v26, 0.0  ;;  %v922_v31 = vmax.f32 %v620_v27, %v865_v28  ;;  %v622_v32 = vpop.f32.mrb[17].mxu1  ;;  %v867_v33 = vpop.f32.mrb[59].mxu0 }
 0x229   :  { %v1958_v35 = vpack.c.bf16 %v1065_v30, %v1064_v29  ;;  %v1048_v7 = vadd.f32 %v993_v34, %v922_v31  ;;  %v1028_v30 = vpop.permute.xlu0 %1027 }
 0x22a   :  { %v625_v36 = vpop.f32.mrb[18].mxu1  ;;  %v870_v37 = vpop.f32.mrb[60].mxu0 }
 0x22b   :  { %v923_v38 = vmax.f32 %v625_v36, %v870_v37  ;;  %v627_v39 = vpop.f32.mrb[19].mxu1  ;;  %v872_v40 = vpop.f32.mrb[61].mxu0  ;;  %1959 = vmatpush1.bf16.msra.mxu1 %v1958_v35  ;;  %v1066_v45 = vmax.f32 %v1048_v7, 0.0 }
 0x22c   :  { %1960 = vmatprep.subr.bf16.mxu1 %v2053_v5 }
 0x22d   :  { %v1049_v42 = vadd.f32 %v998_v41, %v923_v38  ;;  %v1033_v38 = vpop.permute.xlu1 %1032 }
 0x22e   :  { %v630_v43 = vpop.f32.mrb[20].mxu1  ;;  %v875_v44 = vpop.f32.mrb[62].mxu0 }
 0x22f   :  { %v1067_v46 = vmax.f32 %v1049_v42, 0.0  ;;  %v924_v47 = vmax.f32 %v630_v43, %v875_v44  ;;  %v632_v48 = vpop.f32.mrb[21].mxu1  ;;  %v877_v49 = vpop.f32.mrb[63].mxu0 }
 0x231   :  { %v1961_v51 = vpack.c.bf16 %v1067_v46, %v1066_v45  ;;  %v1050_v54 = vadd.f32 %v1003_v50, %v924_v47  ;;  %v1038_v46 = vpop.permute.xlu0 %1037 }
 0x232   :  { %v635_v52 = vpop.f32.mrb[22].mxu1  ;;  %v880_v53 = vpop.f32.mrb[64].mxu0 }
 0x233   :  { %v925_v55 = vmax.f32 %v635_v52, %v880_v53  ;;  %v637_v56 = vpop.f32.mrb[23].mxu1  ;;  %v882_v57 = vpop.f32.mrb[65].mxu0  ;;  %1962 = vmatpush1.bf16.msra.mxu1 %v1961_v51  ;;  %v1068_v62 = vmax.f32 %v1050_v54, 0.0  ;;  %v1076_v51 = vld [vmem:[%s2828_s2 + $0x390] sm:$0xff]  ;;  %v1079_v52 = vld [vmem:[%s2828_s2 + $0x3a8] sm:$0xff]  ;;  %v1078_v53 = vld [vmem:[%s2828_s2 + $0x3a0] sm:$0xff] }
 0x234   :  { %1963 = vmatprep.subr.bf16.mxu1 %v2053_v5  ;;  %v1081_v54 = vld [vmem:[%s2828_s2 + $0x3b8] sm:$0xff]  ;;  %v1083_v56 = vld [vmem:[%s2828_s2 + $0x3c8] sm:$0xff]  ;;  %v1082_v57 = vld [vmem:[%s2828_s2 + $0x3c0] sm:$0xff] }
 0x235   :  { %v1051_v59 = vadd.f32 %v1008_v58, %v925_v55  ;;  %v1080_v55 = vld [vmem:[%s2828_s2 + $0x3b0] sm:$0xff]  ;;  %v1085_v58 = vld [vmem:[%s2828_s2 + $0x3d8] sm:$0xff] }
 0x236   :  { %v640_v60 = vpop.f32.mrb[24].mxu1  ;;  %v885_v61 = vpop.f32.mrb[66].mxu0 }
 0x237   :  { %v1069_v63 = vmax.f32 %v1051_v59, 0.0  ;;  %v926_v0 = vmax.f32 %v640_v60, %v885_v61  ;;  %v642_v1 = vpop.f32.mrb[25].mxu1  ;;  %v887_v2 = vpop.f32.mrb[67].mxu0  ;;  %v1084_v59 = vld [vmem:[%s2828_s2 + $0x3d0] sm:$0xff]  ;;  %v1087_v60 = vld [vmem:[%s2828_s2 + $0x3e8] sm:$0xff]  ;;  %v1086_v61 = vld [vmem:[%s2828_s2 + $0x3e0] sm:$0xff] }
 0x238   :  { %v1090_v1 = vld [vmem:[%s2828_s2 + $0x400] sm:$0xff]  ;;  %v1093_v2 = vld [vmem:[%s2828_s2 + $0x418] sm:$0xff] }
 0x239   :  { %v1964_v4 = vpack.c.bf16 %v1069_v63, %v1068_v62  ;;  %v1052_v9 = vadd.f32 %v1013_v3, %v926_v0  ;;  %v1089_v62 = vld [vmem:[%s2828_s2 + $0x3f8] sm:$0xff]  ;;  %v1088_v63 = vld [vmem:[%s2828_s2 + $0x3f0] sm:$0xff]  ;;  %v1091_v0 = vld [vmem:[%s2828_s2 + $0x408] sm:$0xff] }
 0x23a   :  { %v645_v6 = vpop.f32.mrb[26].mxu1  ;;  %v890_v8 = vpop.f32.mrb[68].mxu0  ;;  %v1092_v3 = vld [vmem:[%s2828_s2 + $0x410] sm:$0xff] }
 0x23b   :  { %v927_v10 = vmax.f32 %v645_v6, %v890_v8  ;;  %v647_v11 = vpop.f32.mrb[27].mxu1  ;;  %v892_v12 = vpop.f32.mrb[69].mxu0  ;;  %1965 = vmatpush1.bf16.msra.mxu1 %v1964_v4  ;;  %v1070_v17 = vmax.f32 %v1052_v9, 0.0  ;;  %v1095_v4 = vld [vmem:[%s2828_s2 + $0x428] sm:$0xff]  ;;  %v1094_v6 = vld [vmem:[%s2828_s2 + $0x420] sm:$0xff]  ;;  %v1097_v8 = vld [vmem:[%s2828_s2 + $0x438] sm:$0xff] }
 0x23c   :  { %1966 = vmatprep.subr.bf16.mxu1 %v2053_v5  ;;  %v1096_v9 = vld [vmem:[%s2828_s2 + $0x430] sm:$0xff]  ;;  %v1098_v11 = vld [vmem:[%s2828_s2 + $0x440] sm:$0xff]  ;;  %v1101_v12 = vld [vmem:[%s2828_s2 + $0x458] sm:$0xff] }
 0x23d   :  { %v1053_v14 = vadd.f32 %v1018_v13, %v927_v10  ;;  %v1099_v10 = vld [vmem:[%s2828_s2 + $0x448] sm:$0xff]  ;;  %v1100_v13 = vld [vmem:[%s2828_s2 + $0x450] sm:$0xff] }
 0x23e   :  { %v650_v15 = vpop.f32.mrb[28].mxu1  ;;  %v895_v16 = vpop.f32.mrb[70].mxu0 }
 0x23f   :  { %v1071_v18 = vmax.f32 %v1053_v14, 0.0  ;;  %v928_v19 = vmax.f32 %v650_v15, %v895_v16  ;;  %v652_v20 = vpop.f32.mrb[29].mxu1  ;;  %v897_v21 = vpop.f32.mrb[71].mxu0  ;;  %v1103_v14 = vld [vmem:[%s2828_s2 + $0x468] sm:$0xff]  ;;  %v1102_v15 = vld [vmem:[%s2828_s2 + $0x460] sm:$0xff]  ;;  %v1105_v16 = vld [vmem:[%s2828_s2 + $0x478] sm:$0xff] }
 0x241   :  { %v1967_v23 = vpack.c.bf16 %v1071_v18, %v1070_v17  ;;  %v1054_v26 = vadd.f32 %v1023_v22, %v928_v19  ;;  %v1104_v17 = vld [vmem:[%s2828_s2 + $0x470] sm:$0xff]  ;;  %v1107_v18 = vld [vmem:[%s2828_s2 + $0x488] sm:$0xff]  ;;  %v1106_v19 = vld [vmem:[%s2828_s2 + $0x480] sm:$0xff]  ;;  %v1127_v22 = vpop.permute.xlu1 %1126 }
 0x242   :  { %v655_v24 = vpop.f32.mrb[30].mxu1  ;;  %v900_v25 = vpop.f32.mrb[72].mxu0 }
 0x243   :  { %v929_v27 = vmax.f32 %v655_v24, %v900_v25  ;;  %v657_v28 = vpop.f32.mrb[31].mxu1  ;;  %v902_v29 = vpop.f32.mrb[73].mxu0  ;;  %1968 = vmatpush1.bf16.msra.mxu1 %v1967_v23  ;;  %v1072_v34 = vmax.f32 %v1054_v26, 0.0 }
 0x244   :  { %1969 = vmatprep.subr.bf16.mxu1 %v2053_v5  ;;  %v1132_v24 = vpop.permute.xlu0 %1131 }
 0x245   :  { %v1055_v31 = vadd.f32 %v1028_v30, %v929_v27 }
 0x246   :  { %v660_v32 = vpop.f32.mrb[32].mxu1  ;;  %v905_v33 = vpop.f32.mrb[74].mxu0 }
 0x247   :  { %v1073_v35 = vmax.f32 %v1055_v31, 0.0  ;;  %v930_v36 = vmax.f32 %v660_v32, %v905_v33  ;;  %v662_v37 = vpop.f32.mrb[33].mxu1  ;;  %v907_v7 = vpop.f32.mrb[75].mxu0 }
 0x248   :  { %v1137_v33 = vpop.permute.xlu1 %1136 }
 0x249   :  { %v1970_v39 = vpack.c.bf16 %v1073_v35, %v1072_v34  ;;  %v1056_v42 = vadd.f32 %v1033_v38, %v930_v36  ;;  %v1142_v35 = vpop.permute.xlu0 %1141 }
 0x24a   :  { %v665_v40 = vpop.f32.mrb[34].mxu1  ;;  %v910_v41 = vpop.f32.mrb[76].mxu0 }
 0x24b   :  { %v931_v43 = vmax.f32 %v665_v40, %v910_v41  ;;  %v667_v44 = vpop.f32.mrb[35].mxu1  ;;  %v912_v45 = vpop.f32.mrb[77].mxu0  ;;  %1971 = vmatpush1.bf16.msra.mxu1 %v1970_v39  ;;  %v1074_v48 = vmax.f32 %v1056_v42, 0.0 }
 0x24c   :  { %1972 = vmatprep.subr.bf16.mxu1 %v2053_v5 }
 0x24d   :  { %v1057_v47 = vadd.f32 %v1038_v46, %v931_v43  ;;  %v1147_v43 = vpop.permute.xlu1 %1146  ;;  %v1152_v45 = vpop.permute.xlu0 %1151 }
 0x24f   :  { %v1075_v49 = vmax.f32 %v1057_v47, 0.0 }
 0x251   :  { %v1973_v50 = vpack.c.bf16 %v1075_v49, %v1074_v48 }
 0x253   :  { %1974 = vmatpush1.bf16.msra.mxu1 %v1973_v50 }
 0x256   :  { %1317 = vmatmul.mubr.f32.vlgmr.msra.gmra.mrb[36].mxu1 %v1076_v51 }
 0x257   :  { %1717 = vmatprep.mubr.msk.f32.mxu1 %vm168_vm1, %v1079_v52 }
 0x25a   :  { %1322 = vmatmul.mubr.f32.gmra.mrb[38].mxu1 %v1078_v53 }
 0x25b   :  { %1718 = vmatprep.mubr.msk.f32.mxu1 %vm168_vm1, %v1081_v54  ;;  %v1157_v54 = vpop.permute.xlu1 %1156 }
 0x25e   :  { %1327 = vmatmul.mubr.f32.gmra.mrb[40].mxu1 %v1080_v55 }
 0x25f   :  { %1719 = vmatprep.mubr.msk.f32.mxu1 %vm168_vm1, %v1083_v56  ;;  %v1162_v56 = vpop.permute.xlu0 %1161 }
 0x262   :  { %1332 = vmatmul.mubr.f32.gmra.mrb[42].mxu1 %v1082_v57 }
 0x263   :  { %1720 = vmatprep.mubr.msk.f32.mxu1 %vm168_vm1, %v1085_v58 }
 0x266   :  { %1337 = vmatmul.mubr.f32.gmra.mrb[44].mxu1 %v1084_v59 }
 0x267   :  { %1721 = vmatprep.mubr.msk.f32.mxu1 %vm168_vm1, %v1087_v60 }
 0x26a   :  { %1342 = vmatmul.mubr.f32.gmra.mrb[46].mxu1 %v1086_v61 }
 0x26b   :  { %1722 = vmatprep.mubr.msk.f32.mxu1 %vm168_vm1, %v1089_v62 }
 0x26e   :  { %1347 = vmatmul.mubr.f32.gmra.mrb[48].mxu1 %v1088_v63 }
 0x26f   :  { %1723 = vmatprep.mubr.msk.f32.mxu1 %vm168_vm1, %v1091_v0 }
 0x272   :  { %1352 = vmatmul.mubr.f32.gmra.mrb[50].mxu1 %v1090_v1  ;;  %v1167_v1 = vpop.permute.xlu1 %1166 }
 0x273   :  { %1724 = vmatprep.mubr.msk.f32.mxu1 %vm168_vm1, %v1093_v2 }
 0x276   :  { %1357 = vmatmul.mubr.f32.gmra.mrb[52].mxu1 %v1092_v3  ;;  %v1172_v3 = vpop.permute.xlu0 %1171 }
 0x277   :  { %1725 = vmatprep.mubr.msk.f32.mxu1 %vm168_vm1, %v1095_v4 }
 0x27a   :  { %1362 = vmatmul.mubr.f32.gmra.mrb[54].mxu1 %v1094_v6 }
 0x27b   :  { %1726 = vmatprep.mubr.msk.f32.mxu1 %vm168_vm1, %v1097_v8 }
 0x27e   :  { %1367 = vmatmul.mubr.f32.gmra.mrb[56].mxu1 %v1096_v9 }
 0x27f   :  { %1727 = vmatprep.mubr.msk.f32.mxu1 %vm168_vm1, %v1099_v10 }
 0x282   :  { %1372 = vmatmul.mubr.f32.gmra.mrb[58].mxu1 %v1098_v11 }
 0x283   :  { %1728 = vmatprep.mubr.msk.f32.mxu1 %vm168_vm1, %v1101_v12 }
 0x286   :  { %1377 = vmatmul.mubr.f32.gmra.mrb[60].mxu1 %v1100_v13 }
 0x287   :  { %1729 = vmatprep.mubr.msk.f32.mxu1 %vm168_vm1, %v1103_v14  ;;  %v1177_v14 = vpop.permute.xlu1 %1176 }
 0x28a   :  { %1382 = vmatmul.mubr.f32.gmra.mrb[62].mxu1 %v1102_v15 }
 0x28b   :  { %1730 = vmatprep.mubr.msk.f32.mxu1 %vm168_vm1, %v1105_v16  ;;  %v1182_v16 = vpop.permute.xlu0 %1181 }
 0x28e   :  { %1387 = vmatmul.mubr.f32.gmra.mrb[64].mxu1 %v1104_v17 }
 0x28f   :  { %1731 = vmatprep.mubr.msk.f32.mxu1 %vm168_vm1, %v1107_v18 }
 0x292   :  { %1392 = vmatmul.mubr.f32.gmra.mrb[66].mxu1 %v1106_v19 }
 0x329   :  { %v1318_v20 = vpop.f32.mrb[36].mxu1 }
 0x32a   :  { %v1320_v21 = vpop.f32.mrb[37].mxu1  ;;  %v1319_v23 = vadd.f32 %v1318_v20, %v1127_v22 }
 0x32c   :  { %v1397_v28 = vmax.f32 %v1319_v23, 0.0 }
 0x32d   :  { %v1323_v25 = vpop.f32.mrb[38].mxu1 }
 0x32e   :  { %v1324_v26 = vadd.f32 %v1323_v25, %v1132_v24  ;;  %v1325_v27 = vpop.f32.mrb[39].mxu1  ;;  %v1187_v25 = vpop.permute.xlu1 %1186 }
 0x32f   :  { %v1192_v27 = vpop.permute.xlu0 %1191 }
 0x330   :  { %v1398_v29 = vmax.f32 %v1324_v26, 0.0 }
 0x331   :  { %v1328_v30 = vpop.f32.mrb[40].mxu1 }
 0x332   :  { %v1976_v31 = vpack.c.bf16 %v1398_v29, %v1397_v28  ;;  %v1330_v32 = vpop.f32.mrb[41].mxu1  ;;  %v1329_v34 = vadd.f32 %v1328_v30, %v1137_v33 }
 0x334   :  { %1977 = vmatpush3.bf16.msra.mxu0 %v1976_v31  ;;  %v1399_v38 = vmax.f32 %v1329_v34, 0.0 }
 0x335   :  { %v1333_v36 = vpop.f32.mrb[42].mxu1  ;;  %1978 = vmatprep.subr.bf16.mxu0 %v2053_v5 }
 0x336   :  { %v1334_v37 = vadd.f32 %v1333_v36, %v1142_v35  ;;  %v1335_v7 = vpop.f32.mrb[43].mxu1  ;;  %v1197_v36 = vpop.permute.xlu1 %1196 }
 0x337   :  { %v1202_v7 = vpop.permute.xlu0 %1201 }
 0x338   :  { %v1400_v39 = vmax.f32 %v1334_v37, 0.0 }
 0x339   :  { %v1338_v40 = vpop.f32.mrb[44].mxu1 }
 0x33a   :  { %v1979_v41 = vpack.c.bf16 %v1400_v39, %v1399_v38  ;;  %v1340_v42 = vpop.f32.mrb[45].mxu1  ;;  %v1339_v44 = vadd.f32 %v1338_v40, %v1147_v43 }
 0x33c   :  { %1980 = vmatpush3.bf16.msra.mxu0 %v1979_v41  ;;  %v1401_v49 = vmax.f32 %v1339_v44, 0.0  ;;  %v1413_v44 = vld [vmem:[%s2828_s2 + $0x490] sm:$0xff] }
 0x33d   :  { %v1343_v46 = vpop.f32.mrb[46].mxu1  ;;  %1981 = vmatprep.subr.bf16.mxu0 %v2053_v5 }
 0x33e   :  { %v1344_v47 = vadd.f32 %v1343_v46, %v1152_v45  ;;  %v1345_v48 = vpop.f32.mrb[47].mxu1  ;;  %v1418_v45 = vpop.permute.xlu1 %1417 }
 0x340   :  { %v1402_v50 = vmax.f32 %v1344_v47, 0.0 }
 0x341   :  { %v1348_v51 = vpop.f32.mrb[48].mxu1 }
 0x342   :  { %v1982_v52 = vpack.c.bf16 %v1402_v50, %v1401_v49  ;;  %v1350_v53 = vpop.f32.mrb[49].mxu1  ;;  %v1349_v55 = vadd.f32 %v1348_v51, %v1157_v54 }
 0x343   :  { %v20_v53 = vld [vmem:[%s2827_s1] sm:$0xf] }
 0x344   :  { %1983 = vmatpush3.bf16.msra.mxu0 %v1982_v52  ;;  %v1403_v60 = vmax.f32 %v1349_v55, 0.0  ;;  %v1510_v55 = vsub.f32 1.0, %v20_v53 }
 0x345   :  { %v1353_v57 = vpop.f32.mrb[50].mxu1  ;;  %1984 = vmatprep.subr.bf16.mxu0 %v2053_v5 }
 0x346   :  { %v1354_v58 = vadd.f32 %v1353_v57, %v1162_v56  ;;  %v1355_v59 = vpop.f32.mrb[51].mxu1 }
 0x347   :  { %v1511_v59 = vadd.f32 1e-07, %v1510_v55 }
 0x348   :  { %v1404_v61 = vmax.f32 %v1354_v58, 0.0 }
 0x349   :  { %v1358_v62 = vpop.f32.mrb[52].mxu1 }
 0x34a   :  { %v1985_v63 = vpack.c.bf16 %v1404_v61, %v1403_v60  ;;  %v1360_v0 = vpop.f32.mrb[53].mxu1  ;;  %v1359_v2 = vadd.f32 %v1358_v62, %v1167_v1 }
 0x34c   :  { %1986 = vmatpush3.bf16.msra.mxu0 %v1985_v63  ;;  %v1405_v9 = vmax.f32 %v1359_v2, 0.0 }
 0x34d   :  { %v1363_v4 = vpop.f32.mrb[54].mxu1  ;;  %1987 = vmatprep.subr.bf16.mxu0 %v2053_v5 }
 0x34e   :  { %v1364_v6 = vadd.f32 %v1363_v4, %v1172_v3  ;;  %v1365_v8 = vpop.f32.mrb[55].mxu1 }
 0x350   :  { %v1406_v10 = vmax.f32 %v1364_v6, 0.0 }
 0x351   :  { %v1368_v11 = vpop.f32.mrb[56].mxu1 }
 0x352   :  { %v1988_v12 = vpack.c.bf16 %v1406_v10, %v1405_v9  ;;  %v1370_v13 = vpop.f32.mrb[57].mxu1  ;;  %v1369_v15 = vadd.f32 %v1368_v11, %v1177_v14 }
 0x354   :  { %1989 = vmatpush3.bf16.msra.mxu0 %v1988_v12  ;;  %v1407_v20 = vmax.f32 %v1369_v15, 0.0 }
 0x355   :  { %v1373_v17 = vpop.f32.mrb[58].mxu1  ;;  %1990 = vmatprep.subr.bf16.mxu0 %v2053_v5 }
 0x356   :  { %v1374_v18 = vadd.f32 %v1373_v17, %v1182_v16  ;;  %v1375_v19 = vpop.f32.mrb[59].mxu1 }
 0x358   :  { %v1408_v21 = vmax.f32 %v1374_v18, 0.0 }
 0x359   :  { %v1378_v22 = vpop.f32.mrb[60].mxu1 }
 0x35a   :  { %v1991_v23 = vpack.c.bf16 %v1408_v21, %v1407_v20  ;;  %v1380_v24 = vpop.f32.mrb[61].mxu1  ;;  %v1379_v26 = vadd.f32 %v1378_v22, %v1187_v25 }
 0x35c   :  { %1992 = vmatpush3.bf16.msra.mxu0 %v1991_v23  ;;  %v1409_v31 = vmax.f32 %v1379_v26, 0.0 }
 0x35d   :  { %v1383_v28 = vpop.f32.mrb[62].mxu1  ;;  %1993 = vmatprep.subr.bf16.mxu0 %v2053_v5 }
 0x35e   :  { %v1384_v29 = vadd.f32 %v1383_v28, %v1192_v27  ;;  %v1385_v30 = vpop.f32.mrb[63].mxu1 }
 0x360   :  { %v1410_v32 = vmax.f32 %v1384_v29, 0.0 }
 0x361   :  { %v1388_v33 = vpop.f32.mrb[64].mxu1 }
 0x362   :  { %v1994_v34 = vpack.c.bf16 %v1410_v32, %v1409_v31  ;;  %v1390_v35 = vpop.f32.mrb[65].mxu1  ;;  %v1389_v37 = vadd.f32 %v1388_v33, %v1197_v36  ;;  %v1543_v36 = vld [vmem:[%s2828_s2 + $0x4b0] sm:$0xff] }
 0x364   :  { %1995 = vmatpush3.bf16.msra.mxu0 %v1994_v34  ;;  %v1411_v41 = vmax.f32 %v1389_v37, 0.0  ;;  %v1554_v37 = vpop.permute.xlu1 %1553 }
 0x365   :  { %v1393_v38 = vpop.f32.mrb[66].mxu1  ;;  %1996 = vmatprep.subr.bf16.mxu0 %v2053_v5  ;;  %v1542_v5 = vld [vmem:[%s2828_s2 + $0x4a0] sm:$0xff] }
 0x366   :  { %v1394_v39 = vadd.f32 %v1393_v38, %v1202_v7  ;;  %v1395_v40 = vpop.f32.mrb[67].mxu1  ;;  %v1549_v38 = vpop.permute.xlu0 %1548 }
 0x368   :  { %v1412_v42 = vmax.f32 %v1394_v39, 0.0 }
 0x36a   :  { %v1997_v43 = vpack.c.bf16 %v1412_v42, %v1411_v41 }
 0x36c   :  { %1998 = vmatpush3.bf16.msra.mxu0 %v1997_v43 }
 0x36f   :  { %1878 = vmatmul.mubr.f32.vlgmr.msra.gmra.mrb[78].mxu0 %v1413_v44 }
 0x370   :  { %1882 = vmatprep.mubr.msk.f32.mxu0 %vm1556_vm3, %v1542_v5 }
 0x442   :  { %v1486_v46 = vpop.f32.mrb[78].mxu0 }
 0x443   :  { %v1487_v47 = vadd.f32 %v1486_v46, %v1418_v45  ;;  %v1879_v48 = vpop.f32.mrb[79].mxu0 }
 0x445   :  { %v1491_v49 = vmin.f32 %v1487_v47, 20.0  ;;  %vm1490_vm4 = vcmp.gt.f32.partialorder %v1487_v47, 20.0 }
 0x447   :  { %v1492_v50 = vmul.f32 1.442695, %v1491_v49 }
 0x449   :  { %2008 = vpow2.f32 %v1492_v50 }
 0x453   :  { %v2009_v51 = vpop.eup %2008 }
 0x454   :  { %v1494_v52 = vadd.f32 1.0, %v2009_v51 }
 0x456   :  { %2010 = vlog2.f32 %v1494_v52 }
 0x457   :  { %2012 = vlog2.f32 %v20_v53 }
 0x460   :  { %v2011_v54 = vpop.eup %2010 }
 0x461   :  { %v1496_v56 = vmul.f32 0.6931472, %v2011_v54  ;;  %v2013_v60 = vpop.eup %2012 }
 0x462   :  { %v1508_v3 = vmul.f32 0.6931472, %v2013_v60 }
 0x463   :  { %v1497_v57 = vsel %vm1490_vm4, %v1487_v47, %v1496_v56 }
 0x464   :  { %v1500_v58 = vadd.f32 1e-07, %v1497_v57  ;;  %2014 = vlog2.f32 %v1497_v57 }
 0x466   :  { %2016 = vlog2.f32 %v1500_v58 }
 0x467   :  { %2018 = vlog2.f32 %v1511_v59 }
 0x46e   :  { %v2015_v61 = vpop.eup %2014 }
 0x46f   :  { %v1499_v1 = vmul.f32 0.6931472, %v2015_v61 }
 0x470   :  { %v2017_v62 = vpop.eup %2016 }
 0x471   :  { %v1502_v63 = vmul.f32 0.6931472, %v2017_v62  ;;  %v2019_v0 = vpop.eup %2018 }
 0x472   :  { %v1513_v6 = vmul.f32 0.6931472, %v2019_v0 }
 0x473   :  { %v1504_v2 = vrot.slane %v1502_v63, 4 }
 0x475   :  { %v1506_v4 = vsub.f32 %v1499_v1, %v1504_v2 }
 0x477   :  { %v1509_v8 = vadd.f32 %v1508_v3, %v1506_v4 }
 0x479   :  { %v1514_v9 = vsub.f32 %v1509_v8, %v1513_v6 }
 0x47b   :  { %v1515_v10 = vmul.f32 0.5, %v1514_v9 }
 0x47d   :  { %v1516_v11 = vsub.f32 0.0, %v1515_v10 }
 0x47f   :  { %v1517_v12 = vmul.f32 1.442695, %v1516_v11 }
 0x481   :  { %2020 = vpow2.f32 %v1517_v12 }
 0x48b   :  { %v2021_v13 = vpop.eup %2020 }
 0x48c   :  { %v1519_v14 = vadd.f32 1.0, %v2021_v13 }
 0x48e   :  { %2022 = vrcp.f32 %v1519_v14 }
 0x498   :  { %v2023_v15 = vpop.eup %2022 }
 0x499   :  { %v1521_v16 = vmul.f32 %v2023_v15, %v1497_v57 }
 0x49b   :  { %v1523_v17 = vsel %vm1522_vm5, %v1521_v16, -inf }
 0x49c   :  { %v1524_v18 = vrot.slane %v1523_v17, 4 }
 0x49e   :  { %v1525_v19 = vmax.f32 %v1523_v17, %v1524_v18 }
 0x4a0   :  { %v1526_v20 = vrot.slane %v1525_v19, 2 }
 0x4a2   :  { %v1527_v21 = vmax.f32 %v1525_v19, %v1526_v20 }
 0x4a4   :  { %v1528_v22 = vrot.slane %v1527_v21, 1 }
 0x4a6   :  { %v1529_v23 = vmax.f32 %v1527_v21, %v1528_v22 }
 0x4a8   :  { %v1530_v24 = vsub.f32 %v1521_v16, %v1529_v23 }
 0x4aa   :  { %v1531_v25 = vmul.f32 1.442695, %v1530_v24 }
 0x4ac   :  { %2024 = vpow2.f32 %v1531_v25 }
 0x4b6   :  { %v2025_v26 = vpop.eup %2024 }
 0x4b7   :  { %v1533_v27 = vsel %vm1522_vm5, %v2025_v26, 0.0 }
 0x4b8   :  { %v1534_v28 = vrot.slane %v1533_v27, 4 }
 0x4ba   :  { %v1535_v29 = vadd.f32 %v1534_v28, %v1533_v27 }
 0x4bc   :  { %v1536_v30 = vrot.slane %v1535_v29, 2 }
 0x4be   :  { %v1537_v31 = vadd.f32 %v1536_v30, %v1535_v29 }
 0x4c0   :  { %v1538_v32 = vrot.slane %v1537_v31, 1 }
 0x4c2   :  { %v1539_v33 = vadd.f32 %v1538_v32, %v1537_v31 }
 0x4c4   :  { %2026 = vrcp.f32 %v1539_v33 }
 0x4ce   :  { %v2027_v34 = vpop.eup %2026 }
 0x4cf   :  { %v1541_v35 = vmul.f32 %v2027_v34, %v2025_v26 }
 0x4d1   :  { %1880 = vmatprep.subr.msk.mxu0 %vm1522_vm5, %v1541_v35 }
 0x4d2   :  { %1881 = vmatpush3.msk.msra.mxu0 %vm1522_vm5, %v1541_v35 }
 0x4d3   :  { %1883 = vmatmul.mubr.msk.f32.vlgmr.msra.gmra.mrb[80].mxu0 %vm1556_vm3, %v1543_v36 }
 0x5a6   :  { %v1884_v7 = vpop.f32.mrb[80].mxu0 }
 0x5a7   :  { %v1638_v39 = vadd.f32 %v1884_v7, %v1554_v37  ;;  %v1632_v40 = vpop.f32.mrb[81].mxu0 }
 0x5a8   :  { %v1633_v41 = vadd.f32 %v1632_v40, %v1549_v38 }
 0x5a9   :  { %1642 = vst [vmem:[#allocation2 + $0x8] sm:$0xff] %v1638_v39 }
 0x5aa   :  { %1641 = vst [vmem:[#allocation2] sm:$0xff] %v1633_v41 }
 0x5ab   :  { %2039 = shalt.err (!%p2036_p4)
}
 0x5ac   :  { %s2040_s10 = scalar_lea.hbm %s2830_s4, 256 }
 0x5ad   :  { %p2041_p5 = scmp.ne.s32.totalorder %s2830_s4, %s2040_s10  ;;  %p2044_p6 = scmp.lt.u32.totalorder %s2040_s10, %s2830_s4 }
 0x5af   :  { %p2046_p7 = pnand %p2044_p6, %p2041_p5 }
 0x5b1   :  { %2049 = shalt.err (!%p2046_p7)
}
 0x5b2   :  { %s2057_s15 = smov 128   ;;  %s2058_s16 = smov 8  }
 0x5b3   :  { %1654 = dma.vmem_to_hbm [thread:$0]  %s1649_s7, 256, %s2830_s4, [#allocation3], %s2057_s15, %s2057_s15, %s2058_s16  }
 0x5b4   :  { %2050 = dma.done.wait [#allocation3], 256  }
 0x5b5   :  { %2051 = vsyncadd [#allocation3], 4294967040 }
 0x5b6   :  { %1658 = vsyncpa [#allocation3], 1 }

</bundles_post_ra>
